<compile_context>
chip_gen: v7x
topology: tpu7x:2x2x1
jax: 0.10.0
libtpu: 0.0.40
codegen_flags: <defaults>
</compile_context>

<pallas_src>
import functools
import numpy as np

import jax
import jax.numpy as jnp
from jax.experimental import pallas as pl
from jax.experimental.pallas import tpu as pltpu


# -----------------------------------------------------------------------------
# Shared math helpers (used identically by kernels and the JAX reference)
# -----------------------------------------------------------------------------
_GELU_C = 0.7978845608028654  # sqrt(2/pi)


def _gelu(x):
    # TODO(synk): PyTorch nn.GELU() uses the exact erf form; the tanh
    # approximation is used here for robust Mosaic lowering (EUP tanh).
    return 0.5 * x * (1.0 + jnp.tanh(_GELU_C * (x + 0.044715 * x * x * x)))


def _dyt(x, alpha, beta, scale, shift):
    # Dynamic Tanh norm, channels-last: per-channel scale/shift on last dim.
    t = beta * jnp.tanh(alpha * x) + (1.0 - beta) * x
    return t * scale + shift


# -----------------------------------------------------------------------------
# Pallas kernels
# -----------------------------------------------------------------------------
def _lateral_attn_kernel(x_ref, w_ref, b_ref, dyt_ab_ref, scale_ref, shift_ref,
                         f1w_ref, f1b_ref, f2w_ref, f2b_ref, out_ref):
    """1x1 conv + DyT + GELU + ScaleAttention for one batch element."""
    x = x_ref[0].astype(jnp.float32)                                     # (L, Cin)
    y = jnp.dot(x, w_ref[...], preferred_element_type=jnp.float32) + b_ref[...]
    alpha = dyt_ab_ref[0]
    beta = dyt_ab_ref[1]
    lat = _gelu(_dyt(y, alpha, beta, scale_ref[...], shift_ref[...]))    # (L, D)

    # ScaleAttention: global average pool over tokens, fc1 -> ReLU -> fc2 -> sigmoid
    pooled = jnp.mean(lat, axis=0, keepdims=True)                        # (1, D)
    a = jnp.dot(pooled, f1w_ref[...], preferred_element_type=jnp.float32) + f1b_ref[...]
    a = jnp.maximum(a, 0.0)
    a = jnp.dot(a, f2w_ref[...], preferred_element_type=jnp.float32) + f2b_ref[...]
    a = jax.nn.sigmoid(a)                                                # (1, D)

    out_ref[0] = (lat * a).astype(out_ref.dtype)


def _linear_dyt_gelu_kernel(x_ref, w_ref, b_ref, dyt_ab_ref, scale_ref, shift_ref,
                            out_ref):
    """Fused matmul + bias + DyT + GELU (used for the im2col'ed 3x3 convs)."""
    x = x_ref[0].astype(jnp.float32)                                     # (L, K)
    y = jnp.dot(x, w_ref[...], preferred_element_type=jnp.float32) + b_ref[...]
    alpha = dyt_ab_ref[0]
    beta = dyt_ab_ref[1]
    out_ref[0] = _gelu(_dyt(y, alpha, beta, scale_ref[...], shift_ref[...])
                       ).astype(out_ref.dtype)


def _fusion_gate_kernel(up_ref, lat_ref, wu_ref, wl_ref, gb_ref, out_ref):
    """1x1 gate conv on concat([up, lat]) + sigmoid + gated blend."""
    up = up_ref[0].astype(jnp.float32)                                   # (L, D)
    lat = lat_ref[0].astype(jnp.float32)                                 # (L, D)
    g = (jnp.dot(up, wu_ref[...], preferred_element_type=jnp.float32)
         + jnp.dot(lat, wl_ref[...], preferred_element_type=jnp.float32)
         + gb_ref[...])
    g = jax.nn.sigmoid(g)                                                # (L, 2)
    out_ref[0] = (g[:, 0:1] * up + g[:, 1:2] * lat).astype(out_ref.dtype)


# -----------------------------------------------------------------------------
# pallas_call wrappers
# -----------------------------------------------------------------------------
def _rep2(shape):
    """Replicated (grid-invariant) 2-D parameter block."""
    return pl.BlockSpec(shape, lambda b: (0, 0))


_SMEM_SPEC = pl.BlockSpec(memory_space=pltpu.MemorySpace.SMEM)
_PARALLEL = pltpu.CompilerParams(dimension_semantics=("parallel",))


def lateral_attention(x_tok, lp):
    B, L, Cin = x_tok.shape
    D = lp["w"].shape[1]
    D4 = lp["f1w"].shape[1]
    return pl.pallas_call(
        _lateral_attn_kernel,
        out_shape=jax.ShapeDtypeStruct((B, L, D), jnp.float32),
        grid=(B,),
        in_specs=[
            pl.BlockSpec((1, L, Cin), lambda b: (b, 0, 0)),
            _rep2((Cin, D)), _rep2((1, D)),
            _SMEM_SPEC,                               # [alpha, beta] scalars
            _rep2((1, D)), _rep2((1, D)),
            _rep2((D, D4)), _rep2((1, D4)),
            _rep2((D4, D)), _rep2((1, D)),
        ],
        out_specs=pl.BlockSpec((1, L, D), lambda b: (b, 0, 0)),
        compiler_params=_PARALLEL,
    )(x_tok, lp["w"], lp["b"], lp["dyt_ab"], lp["dyt_scale"], lp["dyt_shift"],
      lp["f1w"], lp["f1b"], lp["f2w"], lp["f2b"])


def linear_dyt_gelu(x_tok, w, b, dyt_ab, scale, shift):
    B, L, K = x_tok.shape
    D = w.shape[1]
    return pl.pallas_call(
        _linear_dyt_gelu_kernel,
        out_shape=jax.ShapeDtypeStruct((B, L, D), jnp.float32),
        grid=(B,),
        in_specs=[
            pl.BlockSpec((1, L, K), lambda b: (b, 0, 0)),
            _rep2((K, D)), _rep2((1, D)),
            _SMEM_SPEC,
            _rep2((1, D)), _rep2((1, D)),
        ],
        out_specs=pl.BlockSpec((1, L, D), lambda b: (b, 0, 0)),
        compiler_params=_PARALLEL,
    )(x_tok, w, b, dyt_ab, scale, shift)


def fusion_gate(up_tok, lat_tok, wu, wl, gb):
    B, L, D = up_tok.shape
    return pl.pallas_call(
        _fusion_gate_kernel,
        out_shape=jax.ShapeDtypeStruct((B, L, D), jnp.float32),
        grid=(B,),
        in_specs=[
            pl.BlockSpec((1, L, D), lambda b: (b, 0, 0)),
            pl.BlockSpec((1, L, D), lambda b: (b, 0, 0)),
            _rep2((D, 2)), _rep2((D, 2)), _rep2((1, 2)),
        ],
        out_specs=pl.BlockSpec((1, L, D), lambda b: (b, 0, 0)),
        compiler_params=_PARALLEL,
    )(up_tok, lat_tok, wu, wl, gb)


# -----------------------------------------------------------------------------
# Wrapper-side layout / interpolation helpers (pure data movement)
# -----------------------------------------------------------------------------
@functools.lru_cache(maxsize=None)
def _interp_matrix(in_size, out_size):
    """Dense 1-D bilinear interpolation matrix, PyTorch align_corners=False."""
    M = np.zeros((out_size, in_size), np.float32)
    if in_size == 1:
        M[:, 0] = 1.0
        return M
    scale = in_size / out_size
    for o in range(out_size):
        src = (o + 0.5) * scale - 0.5
        src = max(src, 0.0)
        i0 = min(int(np.floor(src)), in_size - 1)
        frac = src - i0
        i1 = min(i0 + 1, in_size - 1)
        M[o, i0] += 1.0 - frac
        M[o, i1] += frac
    return M


def _bilinear_resize_nhwc(x, out_h, out_w):
    # TODO(synk): bilinear resize is done as interp-matrix einsums in XLA, not Pallas.
    B, H, W, C = x.shape
    if (H, W) == (out_h, out_w):
        return x
    Mh = jnp.asarray(_interp_matrix(H, out_h))
    Mw = jnp.asarray(_interp_matrix(W, out_w))
    y = jnp.einsum('oh,bhwc->bowc', Mh, x)
    y = jnp.einsum('pw,bowc->bopc', Mw, y)
    return y


def _im2col_3x3(x_nhwc):
    """3x3/pad=1 im2col: (B,H,W,C) -> (B, H*W, 9*C) patches (ky,kx outer, C inner)."""
    B, H, W, C = x_nhwc.shape
    xp = jnp.pad(x_nhwc, ((0, 0), (1, 1), (1, 1), (0, 0)))
    cols = [xp[:, ky:ky + H, kx:kx + W, :] for ky in range(3) for kx in range(3)]
    return jnp.concatenate(cols, axis=-1).reshape(B, H * W, 9 * C)


def conv3x3_dyt_gelu(x_nhwc, cp):
    """Conv2d(k=3,pad=1) + DyT(channels_first) + GELU via im2col + fused Pallas matmul."""
    B, H, W, _ = x_nhwc.shape
    patches = _im2col_3x3(x_nhwc)                                        # (B, H*W, 9C)
    out_tok = linear_dyt_gelu(patches, cp["w9"], cp["b"], cp["dyt_ab"],
                              cp["dyt_scale"], cp["dyt_shift"])
    return out_tok.reshape(B, H, W, cp["w9"].shape[1])


# -----------------------------------------------------------------------------
# PyramidFeatureDecoder forward (Pallas path)
# -----------------------------------------------------------------------------
def pyramid_feature_decoder_forward(features, params):
    n = len(features)
    D = params["target_dim"]
    B = features[0].shape[0]

    # 1) lateral 1x1 conv + DyT + GELU + ScaleAttention (one fused kernel per level)
    attended = []
    for i, f in enumerate(features):
        _, Cin, H, W = f.shape
        x_tok = jnp.transpose(f, (0, 2, 3, 1)).reshape(B, H * W, Cin)
        lat = lateral_attention(x_tok, params["lateral"][i])             # (B, H*W, D)
        attended.append(lat.reshape(B, H, W, D))

    # 2) top-down pathway with upsample-conv blocks and gated fusion
    pyramid = [attended[-1]]
    for i in range(n - 2, -1, -1):
        prev = pyramid[-1]                                               # (B, Hp, Wp, D)
        Hp, Wp = prev.shape[1], prev.shape[2]
        up = _bilinear_resize_nhwc(prev, 2 * Hp, 2 * Wp)                 # Upsample x2
        up = conv3x3_dyt_gelu(up, params["upsample"][i])                 # conv+DyT+GELU
        Hl, Wl = attended[i].shape[1], attended[i].shape[2]
        if up.shape[1:3] != (Hl, Wl):
            up = _bilinear_resize_nhwc(up, Hl, Wl)
        gp = params["gate"][i]
        fused = fusion_gate(up.reshape(B, Hl * Wl, D),
                            attended[i].reshape(B, Hl * Wl, D),
                            gp["wu"], gp["wl"], gp["b"])
        pyramid.append(fused.reshape(B, Hl, Wl, D))

    # 3) resize all pyramid levels to target_size and sum
    th, tw = params["target_size"]
    acc = None
    for feat in pyramid:
        r = _bilinear_resize_nhwc(feat, th, tw)
        acc = r if acc is None else acc + r

    # 4) output conv3x3 + DyT + GELU; return tokens == flatten(2).transpose(1,2)
    out = conv3x3_dyt_gelu(acc, params["output"])                        # (B, th, tw, D)
    return out.reshape(B, th * tw, D)


# -----------------------------------------------------------------------------
# Deterministic parameter init (weights stored pre-transposed for y = x @ W)
# -----------------------------------------------------------------------------
def init_params(key, dims, target_dim, target_size=(7, 7)):
    D = target_dim
    D4 = max(D // 4, 1)
    n = len(dims)
    keys = iter(jax.random.split(key, 32 * n + 32))
    f = jnp.float32

    def dyt():
        return {
            "dyt_ab": jnp.array([1.0, 0.5], f),     # [alpha, beta] module defaults
            "dyt_scale": 1.0 + 0.1 * jax.random.normal(next(keys), (1, D), f),
            "dyt_shift": 0.05 * jax.random.normal(next(keys), (1, D), f),
        }

    lateral = []
    for c_in in dims:
        p = {
            "w": 0.3 * jax.random.normal(next(keys), (c_in, D), f),      # 1x1 conv
            "b": 0.05 * jax.random.normal(next(keys), (1, D), f),
            "f1w": 0.3 * jax.random.normal(next(keys), (D, D4), f),      # SE fc1
            "f1b": 0.05 * jax.random.normal(next(keys), (1, D4), f),
            "f2w": 0.3 * jax.random.normal(next(keys), (D4, D), f),      # SE fc2
            "f2b": 0.05 * jax.random.normal(next(keys), (1, D), f),
        }
        p.update(dyt())
        lateral.append(p)

    def conv3x3():
        p = {
            "w9": 0.15 * jax.random.normal(next(keys), (9 * D, D), f),   # (ky,kx,Cin) x Cout
            "b": 0.05 * jax.random.normal(next(keys), (1, D), f),
        }
        p.update(dyt())
        return p

    upsample = [conv3x3() for _ in range(n - 1)]

    gate = [{
        "wu": 0.3 * jax.random.normal(next(keys), (D, 2), f),   # first D channels of concat
        "wl": 0.3 * jax.random.normal(next(keys), (D, 2), f),   # second D channels
        "b": 0.05 * jax.random.normal(next(keys), (1, 2), f),
    } for _ in range(n - 1)]

    return {
        "target_dim": D,
        "target_size": target_size,
        "lateral": lateral,
        "upsample": upsample,
        "gate": gate,
        "output": conv3x3(),
    }


# -----------------------------------------------------------------------------
# Pure-JAX reference (same math) for an in-script correctness check
# -----------------------------------------------------------------------------
def pyramid_feature_decoder_ref(features, params):
    n = len(features)
    D = params["target_dim"]
    B = features[0].shape[0]

    def dyt_gelu(y, p):
        a, bt = p["dyt_ab"][0], p["dyt_ab"][1]
        t = bt * jnp.tanh(a * y) + (1.0 - bt) * y
        return _gelu(t * p["dyt_scale"] + p["dyt_shift"])

    attended = []
    for i, f in enumerate(features):
        _, Cin, H, W = f.shape
        x = jnp.transpose(f, (0, 2, 3, 1)).reshape(B, H * W, Cin)
        lp = params["lateral"][i]
        lat = dyt_gelu(jnp.einsum('blc,cd->bld', x, lp["w"]) + lp["b"], lp)
        pooled = jnp.mean(lat, axis=1, keepdims=True)
        att = jnp.maximum(jnp.einsum('bld,de->ble', pooled, lp["f1w"]) + lp["f1b"], 0.0)
        att = jax.nn.sigmoid(jnp.einsum('ble,ed->bld', att, lp["f2w"]) + lp["f2b"])
        attended.append((lat * att).reshape(B, H, W, D))

    def conv_block(x_nhwc, cp):
        Bc, H, W, _ = x_nhwc.shape
        patches = _im2col_3x3(x_nhwc)
        y = jnp.einsum('blk,kd->bld', patches, cp["w9"]) + cp["b"]
        return dyt_gelu(y, cp).reshape(Bc, H, W, D)

    pyramid = [attended[-1]]
    for i in range(n - 2, -1, -1):
        prev = pyramid[-1]
        Hp, Wp = prev.shape[1], prev.shape[2]
        up = _bilinear_resize_nhwc(prev, 2 * Hp, 2 * Wp)
        up = conv_block(up, params["upsample"][i])
        Hl, Wl = attended[i].shape[1], attended[i].shape[2]
        if up.shape[1:3] != (Hl, Wl):
            up = _bilinear_resize_nhwc(up, Hl, Wl)
        gp = params["gate"][i]
        upf = up.reshape(B, Hl * Wl, D)
        latf = attended[i].reshape(B, Hl * Wl, D)
        g = jax.nn.sigmoid(jnp.einsum('bld,dg->blg', upf, gp["wu"])
                           + jnp.einsum('bld,dg->blg', latf, gp["wl"]) + gp["b"])
        fused = g[..., 0:1] * upf + g[..., 1:2] * latf
        pyramid.append(fused.reshape(B, Hl, Wl, D))

    th, tw = params["target_size"]
    acc = None
    for feat in pyramid:
        r = _bilinear_resize_nhwc(feat, th, tw)
        acc = r if acc is None else acc + r
    out = conv_block(acc, params["output"])
    return out.reshape(B, th * tw, D)


# -----------------------------------------------------------------------------
if __name__ == "__main__":
    key = jax.random.PRNGKey(0)
    kf, kp = jax.random.split(key)

    B = 2
    dims = [8, 16, 32]                     # backbone channel dims per level
    spatial = [(16, 16), (8, 8), (4, 4)]   # decreasing resolution
    target_dim = 32

    fkeys = jax.random.split(kf, len(dims))
    features = [
        jax.random.normal(fkeys[i], (B, dims[i], spatial[i][0], spatial[i][1]),
                          jnp.float32)
        for i in range(len(dims))
    ]
    params = init_params(kp, dims, target_dim)

    out = pyramid_feature_decoder_forward(features, params)
    out = jax.block_until_ready(out)
    assert out.shape == (B, 7 * 7, target_dim), out.shape

    ref = pyramid_feature_decoder_ref(features, params)
    ref = jax.block_until_ready(ref)
    if not np.allclose(np.asarray(out), np.asarray(ref), atol=2e-3, rtol=2e-3):
        err = float(jnp.max(jnp.abs(out - ref)))
        raise AssertionError(
            f"Pallas decoder does not match JAX reference (max abs err {err})")
    print("KERNEL_OK")
</pallas_src>

<mosaic_0001>
module attributes {stable_mosaic.version = 11 : i64} {
  func.func @_lateral_attn_kernel(%arg0: i32, %arg1: memref<1x256x8xf32, #tpu.memory_space<vmem>>, %arg2: memref<8x32xf32, #tpu.memory_space<vmem>>, %arg3: memref<1x32xf32, #tpu.memory_space<vmem>>, %arg4: memref<2xf32, #tpu.memory_space<smem>>, %arg5: memref<1x32xf32, #tpu.memory_space<vmem>>, %arg6: memref<1x32xf32, #tpu.memory_space<vmem>>, %arg7: memref<32x8xf32, #tpu.memory_space<vmem>>, %arg8: memref<1x8xf32, #tpu.memory_space<vmem>>, %arg9: memref<8x32xf32, #tpu.memory_space<vmem>>, %arg10: memref<1x32xf32, #tpu.memory_space<vmem>>, %arg11: memref<1x256x32xf32, #tpu.memory_space<vmem>>) attributes {dimension_semantics = [#tpu.dimension_semantics<parallel>], iteration_bounds = array<i64: 2>, scalar_prefetch = 0 : i64, scratch_operands = 0 : i64, tpu.core_type = #tpu.core_type<tc>, window_params = [{transform_indices = @transform_0, window_bounds = array<i64: 1, 256, 8>}, {pipeline_mode = #tpu.pipeline_mode<synchronous>, transform_indices = @transform_1, window_bounds = array<i64: 8, 32>}, {pipeline_mode = #tpu.pipeline_mode<synchronous>, transform_indices = @transform_2, window_bounds = array<i64: 1, 32>}, {transform_indices = @transform_3, window_bounds = array<i64: 2>}, {pipeline_mode = #tpu.pipeline_mode<synchronous>, transform_indices = @transform_4, window_bounds = array<i64: 1, 32>}, {pipeline_mode = #tpu.pipeline_mode<synchronous>, transform_indices = @transform_5, window_bounds = array<i64: 1, 32>}, {pipeline_mode = #tpu.pipeline_mode<synchronous>, transform_indices = @transform_6, window_bounds = array<i64: 32, 8>}, {pipeline_mode = #tpu.pipeline_mode<synchronous>, transform_indices = @transform_7, window_bounds = array<i64: 1, 8>}, {pipeline_mode = #tpu.pipeline_mode<synchronous>, transform_indices = @transform_8, window_bounds = array<i64: 8, 32>}, {pipeline_mode = #tpu.pipeline_mode<synchronous>, transform_indices = @transform_9, window_bounds = array<i64: 1, 32>}, {transform_indices = @transform_10, window_bounds = array<i64: 1, 256, 32>}]} {
    %c0 = arith.constant 0 : index
    %c0_0 = arith.constant 0 : index
    %c0_1 = arith.constant 0 : index
    %0 = vector.load %arg1[%c0, %c0_0, %c0_1] : memref<1x256x8xf32, #tpu.memory_space<vmem>>, vector<1x256x8xf32>
    %1 = vector.shape_cast %0 : vector<1x256x8xf32> to vector<256x8xf32>
    %c0_2 = arith.constant 0 : index
    %c0_3 = arith.constant 0 : index
    %2 = vector.load %arg2[%c0_2, %c0_3] : memref<8x32xf32, #tpu.memory_space<vmem>>, vector<8x32xf32>
    %cst = arith.constant dense<0.000000e+00> : vector<256x32xf32>
    %3 = tpu.matmul %1, %2, %cst {dimension_numbers = #tpu.dot_dimension_numbers<[1], [0], [0], [1], [0, 0, 1, 1], [], []>} : vector<256x8xf32>, vector<8x32xf32>, vector<256x32xf32> -> vector<256x32xf32>
    %c0_4 = arith.constant 0 : index
    %c0_5 = arith.constant 0 : index
    %4 = vector.load %arg3[%c0_4, %c0_5] : memref<1x32xf32, #tpu.memory_space<vmem>>, vector<1x32xf32>
    %5 = vector.broadcast %4 : vector<1x32xf32> to vector<256x32xf32>
    %6 = arith.addf %3, %5 : vector<256x32xf32>
    %c0_6 = arith.constant 0 : index
    %7 = memref.load %arg4[%c0_6] : memref<2xf32, #tpu.memory_space<smem>>
    %c1 = arith.constant 1 : index
    %8 = memref.load %arg4[%c1] : memref<2xf32, #tpu.memory_space<smem>>
    %c0_7 = arith.constant 0 : index
    %c0_8 = arith.constant 0 : index
    %9 = vector.load %arg5[%c0_7, %c0_8] : memref<1x32xf32, #tpu.memory_space<vmem>>, vector<1x32xf32>
    %c0_9 = arith.constant 0 : index
    %c0_10 = arith.constant 0 : index
    %10 = vector.load %arg6[%c0_9, %c0_10] : memref<1x32xf32, #tpu.memory_space<vmem>>, vector<1x32xf32>
    %11 = vector.broadcast %7 : f32 to vector<256x32xf32>
    %12 = arith.mulf %11, %6 : vector<256x32xf32>
    %13 = math.tanh %12 : vector<256x32xf32>
    %14 = vector.broadcast %8 : f32 to vector<256x32xf32>
    %15 = arith.mulf %14, %13 : vector<256x32xf32>
    %cst_11 = arith.constant 1.000000e+00 : f32
    %16 = arith.subf %cst_11, %8 : f32
    %17 = vector.broadcast %16 : f32 to vector<256x32xf32>
    %18 = arith.mulf %17, %6 : vector<256x32xf32>
    %19 = arith.addf %15, %18 : vector<256x32xf32>
    %20 = vector.broadcast %9 : vector<1x32xf32> to vector<256x32xf32>
    %21 = arith.mulf %19, %20 : vector<256x32xf32>
    %22 = vector.broadcast %10 : vector<1x32xf32> to vector<256x32xf32>
    %23 = arith.addf %21, %22 : vector<256x32xf32>
    %cst_12 = arith.constant 5.000000e-01 : f32
    %24 = vector.broadcast %cst_12 : f32 to vector<256x32xf32>
    %25 = arith.mulf %24, %23 : vector<256x32xf32>
    %cst_13 = arith.constant 4.471500e-02 : f32
    %26 = vector.broadcast %cst_13 : f32 to vector<256x32xf32>
    %27 = arith.mulf %26, %23 : vector<256x32xf32>
    %28 = arith.mulf %27, %23 : vector<256x32xf32>
    %29 = arith.mulf %28, %23 : vector<256x32xf32>
    %30 = arith.addf %23, %29 : vector<256x32xf32>
    %cst_14 = arith.constant 0.797884583 : f32
    %31 = vector.broadcast %cst_14 : f32 to vector<256x32xf32>
    %32 = arith.mulf %31, %30 : vector<256x32xf32>
    %33 = math.tanh %32 : vector<256x32xf32>
    %cst_15 = arith.constant 1.000000e+00 : f32
    %34 = vector.broadcast %cst_15 : f32 to vector<256x32xf32>
    %35 = arith.addf %34, %33 : vector<256x32xf32>
    %36 = arith.mulf %25, %35 : vector<256x32xf32>
    %cst_16 = arith.constant dense<0.000000e+00> : vector<32xf32>
    %37 = vector.multi_reduction <add>, %36, %cst_16 [0] : vector<256x32xf32> to vector<32xf32>
    %38 = vector.shape_cast %37 : vector<32xf32> to vector<1x32xf32>
    %cst_17 = arith.constant 2.560000e+02 : f32
    %39 = vector.broadcast %cst_17 : f32 to vector<1x32xf32>
    %40 = arith.divf %38, %39 : vector<1x32xf32>
    %c0_18 = arith.constant 0 : index
    %c0_19 = arith.constant 0 : index
    %41 = vector.load %arg7[%c0_18, %c0_19] : memref<32x8xf32, #tpu.memory_space<vmem>>, vector<32x8xf32>
    %cst_20 = arith.constant dense<0.000000e+00> : vector<1x8xf32>
    %42 = tpu.matmul %40, %41, %cst_20 {dimension_numbers = #tpu.dot_dimension_numbers<[1], [0], [0], [1], [0, 0, 1, 1], [], []>} : vector<1x32xf32>, vector<32x8xf32>, vector<1x8xf32> -> vector<1x8xf32>
    %c0_21 = arith.constant 0 : index
    %c0_22 = arith.constant 0 : index
    %43 = vector.load %arg8[%c0_21, %c0_22] : memref<1x8xf32, #tpu.memory_space<vmem>>, vector<1x8xf32>
    %44 = arith.addf %42, %43 : vector<1x8xf32>
    %cst_23 = arith.constant 0.000000e+00 : f32
    %45 = vector.broadcast %cst_23 : f32 to vector<1x8xf32>
    %46 = arith.maximumf %44, %45 : vector<1x8xf32>
    %c0_24 = arith.constant 0 : index
    %c0_25 = arith.constant 0 : index
    %47 = vector.load %arg9[%c0_24, %c0_25] : memref<8x32xf32, #tpu.memory_space<vmem>>, vector<8x32xf32>
    %cst_26 = arith.constant dense<0.000000e+00> : vector<1x32xf32>
    %48 = tpu.matmul %46, %47, %cst_26 {dimension_numbers = #tpu.dot_dimension_numbers<[1], [0], [0], [1], [0, 0, 1, 1], [], []>} : vector<1x8xf32>, vector<8x32xf32>, vector<1x32xf32> -> vector<1x32xf32>
    %c0_27 = arith.constant 0 : index
    %c0_28 = arith.constant 0 : index
    %49 = vector.load %arg10[%c0_27, %c0_28] : memref<1x32xf32, #tpu.memory_space<vmem>>, vector<1x32xf32>
    %50 = arith.addf %48, %49 : vector<1x32xf32>
    %51 = arith.negf %50 : vector<1x32xf32>
    %52 = math.exp %51 : vector<1x32xf32>
    %cst_29 = arith.constant 1.000000e+00 : f32
    %53 = vector.broadcast %cst_29 : f32 to vector<1x32xf32>
    %54 = arith.addf %53, %52 : vector<1x32xf32>
    %55 = arith.divf %53, %54 : vector<1x32xf32>
    %56 = vector.broadcast %55 : vector<1x32xf32> to vector<256x32xf32>
    %57 = arith.mulf %36, %56 : vector<256x32xf32>
    %c0_30 = arith.constant 0 : index
    %c0_31 = arith.constant 0 : index
    %c0_32 = arith.constant 0 : index
    %58 = vector.load %arg11[%c0_30, %c0_31, %c0_32] : memref<1x256x32xf32, #tpu.memory_space<vmem>>, vector<1x256x32xf32>
    %59 = vector.shape_cast %58 : vector<1x256x32xf32> to vector<256x32xf32>
    %60 = vector.shape_cast %57 : vector<256x32xf32> to vector<1x256x32xf32>
    tpu.vector_store %arg11[%c0_30, %c0_31, %c0_32], %60 {strides = array<i32>} : memref<1x256x32xf32, #tpu.memory_space<vmem>>, vector<1x256x32xf32>,
    return
  }
  func.func @transform_0(%arg0: i32) -> (i32, i32, i32) {
    %c0_i32 = arith.constant 0 : i32
    %c0_i32_0 = arith.constant 0 : i32
    %c0_i32_1 = arith.constant 0 : i32
    return %arg0, %c0_i32, %c0_i32_0 : i32, i32, i32
  }
  func.func @transform_1(%arg0: i32) -> (i32, i32) {
    %c0_i32 = arith.constant 0 : i32
    %c0_i32_0 = arith.constant 0 : i32
    %c0_i32_1 = arith.constant 0 : i32
    return %c0_i32, %c0_i32_0 : i32, i32
  }
  func.func @transform_2(%arg0: i32) -> (i32, i32) {
    %c0_i32 = arith.constant 0 : i32
    %c0_i32_0 = arith.constant 0 : i32
    %c0_i32_1 = arith.constant 0 : i32
    return %c0_i32, %c0_i32_0 : i32, i32
  }
  func.func @transform_3(%arg0: i32) -> i32 {
    %c0_i32 = arith.constant 0 : i32
    %c0_i32_0 = arith.constant 0 : i32
    return %c0_i32 : i32
  }
  func.func @transform_4(%arg0: i32) -> (i32, i32) {
    %c0_i32 = arith.constant 0 : i32
    %c0_i32_0 = arith.constant 0 : i32
    %c0_i32_1 = arith.constant 0 : i32
    return %c0_i32, %c0_i32_0 : i32, i32
  }
  func.func @transform_5(%arg0: i32) -> (i32, i32) {
    %c0_i32 = arith.constant 0 : i32
    %c0_i32_0 = arith.constant 0 : i32
    %c0_i32_1 = arith.constant 0 : i32
    return %c0_i32, %c0_i32_0 : i32, i32
  }
  func.func @transform_6(%arg0: i32) -> (i32, i32) {
    %c0_i32 = arith.constant 0 : i32
    %c0_i32_0 = arith.constant 0 : i32
    %c0_i32_1 = arith.constant 0 : i32
    return %c0_i32, %c0_i32_0 : i32, i32
  }
  func.func @transform_7(%arg0: i32) -> (i32, i32) {
    %c0_i32 = arith.constant 0 : i32
    %c0_i32_0 = arith.constant 0 : i32
    %c0_i32_1 = arith.constant 0 : i32
    return %c0_i32, %c0_i32_0 : i32, i32
  }
  func.func @transform_8(%arg0: i32) -> (i32, i32) {
    %c0_i32 = arith.constant 0 : i32
    %c0_i32_0 = arith.constant 0 : i32
    %c0_i32_1 = arith.constant 0 : i32
    return %c0_i32, %c0_i32_0 : i32, i32
  }
  func.func @transform_9(%arg0: i32) -> (i32, i32) {
    %c0_i32 = arith.constant 0 : i32
    %c0_i32_0 = arith.constant 0 : i32
    %c0_i32_1 = arith.constant 0 : i32
    return %c0_i32, %c0_i32_0 : i32, i32
  }
  func.func @transform_10(%arg0: i32) -> (i32, i32, i32) {
    %c0_i32 = arith.constant 0 : i32
    %c0_i32_0 = arith.constant 0 : i32
    %c0_i32_1 = arith.constant 0 : i32
    return %arg0, %c0_i32, %c0_i32_0 : i32, i32, i32
  }
}

</mosaic_0001>

<bundles_post_ra>
// kernel: tpu_custom_call.1
= control target key start
LH: loop header
LB: loop body
LE: loop exit
PB: predicated region body
PF: predicated region fallthrough
CT: control target
= control target key end

     0   :  { %15 = vsyncpa [#allocation3], 0  ;;  %s2043_s13 = smov 0   ;;  %s3032_s0 = inlined_call_operand.vmem [shape: f32[2,256,8], index: 0, kind: input, shape index: {}]   ;;  %s3033_s1 = inlined_call_operand.vmem [shape: f32[8,32], index: 1, kind: input, shape index: {}]   ;;  %s3034_s2 = inlined_call_operand.vmem [shape: f32[1,32], index: 2, kind: input, shape index: {}]   ;;  %s3035_s3 = inlined_call_operand.vmem [shape: f32[2], index: 3, kind: input, shape index: {}]   ;;  %s3036_s4 = inlined_call_operand.vmem [shape: f32[1,32], index: 4, kind: input, shape index: {}]   ;;  %s3037_s5 = inlined_call_operand.vmem [shape: f32[1,32], index: 5, kind: input, shape index: {}]   ;;  %s3038_s6 = inlined_call_operand.vmem [shape: f32[32,8], index: 6, kind: input, shape index: {}]   ;;  %s3039_s7 = inlined_call_operand.vmem [shape: f32[1,8], index: 7, kind: input, shape index: {}]   ;;  %s3040_s8 = inlined_call_operand.vmem [shape: f32[8,32], index: 8, kind: input, shape index: {}]   ;;  %s3041_s9 = inlined_call_operand.vmem [shape: f32[1,32], index: 9, kind: input, shape index: {}]   ;;  %s3042_s10 = inlined_call_operand.vmem [shape: f32[2,256,32], index: 10, kind: output, shape index: {}]  }
   0x1 LB: > { %s2049_s14 = sadd.s32 4294967295, %s1982_s13   ;;  %p1637_p0 = scmp.ge.s32.totalorder %s1982_s13, 1  ;;  %s1982_s13 = sphi %s2043_s13, %s21_s13  }
   0x2   : > { %p267_p1 = scmp.lt.s32.totalorder %s1982_s13, 3  ;;  %s286_s17 = sshll.u32 %s3035_s3, 4  ;;  %s287_s17 = int_to_ptr.vmem [resolvable:$true] %s286_s17 }
   0x3   : > { %p1811_p3 = scmp.eq.s32.totalorder %s2049_s14, 0  ;;  %s1957_s19 = scalar_lea.vmem %s287_s17, 16 }
   0x4   : > { %p2056_p2 = pnand %p1637_p0, %p267_p1  ;;  %p1958_p6 = scmp.ne.s32.totalorder %s287_s17, %s1957_s19 }
   0x5   : > { %p1965_p10 = scmp.lt.s32.totalorder %s287_s17, %s287_s17  ;;  %p1966_p11 = scmp.lt.s32.totalorder %s1957_s19, %s1957_s19 }
   0x6   : > { %p1807_p4 = pneg %p2056_p2 }
   0x7   : > { %p1967_p12 = por %p1966_p11, %p1965_p10 }
   0x8   : > { %p1808_p5 = pnand %p1811_p3, %p1807_p4 }
   0xa   : > { %p1959_p7 = pneg %p1808_p5 }
   0xc   : > { %p1960_p8 = pnand %p1959_p7, %p1958_p6 }
   0xe   : > { %p1961_p9 = pneg %p1960_p8 }
  0x10   : > { %p1968_p13 = pnand %p1967_p12, %p1961_p9 }
  0x12   : > { %1971 = shalt.err (!%p1968_p13)
}
  0x13   : > { %s1984_s20 = smov [#allocation2]   ;;  %325 = sbr.rel (%p2056_p2) target bundleno = 917 (0x395), region = 60 }
  0x14   : > { %1810 = dma.vmem_to_smem (!%p1808_p5), %s287_s17, 16, %s1984_s20, [#allocation3]  }
  0x1a   : > { %1977 = dma.done.wait (%p1811_p3), [#allocation3], 16  }
  0x1b   : > { %1979 = vsyncadd (%p1811_p3), [#allocation3], 4294967280 }
  0x1c   : > { %331 = sfence }
  0x1d   : > { %v406_v0 = vld [vmem:[%s3033_s1] sm:$0xff]  ;;  %p364_p0 = scmp.lt.s32.totalorder %s2049_s14, 1  ;;  %vm414_vm0 = vcmask 64512   ;;  %s736_s27 = sld [smem:[#allocation2]]  ;;  %vm1268_vm1 = vcmask 261120   ;;  %vm1986_vm2 = vmmov 0  }
  0x1e   : > { %1729 = vmatprep.subr.mxu0 %v406_v0  ;;  %1801 = vmatprep.subr.mxu1 %v406_v0  ;;  %v2153_v41 = vld [vmem:[%s3034_s2] ss:$0 sm:$0xff]  ;;  %s1679_s30 = sld [smem:[#allocation2 + $0x1]] }
  0x1f   : > { %1730 = vmatpush3.msra.mxu0 %v406_v0  ;;  %s3063_s14 = smov (!%p364_p0, %s2049_s14), 1  ;;  %1802 = vmatpush3.msra.mxu1 %v406_v0 }
  0x20   : > { %s1687_s23 = sshll.u32 %s3063_s14, 8 }
  0x21   : > { %s2084_s26 = scalar_lea.vmem %s3032_s0, %s1687_s23  ;;  %s2931_s17 = scalar_lea.vmem %s3042_s10, %s1687_s23 }
  0x22   : > { %v374_v1 = vld [vmem:[%s2084_s26] sm:$0xff]  ;;  %v375_v2 = vld [vmem:[%s2084_s26 + $0x8] sm:$0xff]  ;;  %v392_v3 = vld [vmem:[%s2084_s26 + $0x90] sm:$0xff] }
  0x23   : > { %1731 = vmatprep.mubr.msk.f32.mxu0 %vm414_vm0, %v374_v1  ;;  %1758 = vmatprep.mubr.msk.f32.mxu1 %vm414_vm0, %v392_v3  ;;  %v393_v4 = vld [vmem:[%s2084_s26 + $0x98] sm:$0xff]  ;;  %v376_v5 = vld [vmem:[%s2084_s26 + $0x10] sm:$0xff]  ;;  %v394_v6 = vld [vmem:[%s2084_s26 + $0xa0] sm:$0xff]  ;;  %v2160_v47 = vstv %s736_s27 }
  0x24   : > { %1732 = vmatmul.mubr.msk.f32.vlgmr.msra.gmra.mrb[0].mxu0 %vm414_vm0, %v375_v2  ;;  %1759 = vmatmul.mubr.msk.f32.vlgmr.msra.gmra.mrb[0].mxu1 %vm414_vm0, %v393_v4  ;;  %v377_v7 = vld [vmem:[%s2084_s26 + $0x18] sm:$0xff]  ;;  %v395_v8 = vld [vmem:[%s2084_s26 + $0xa8] sm:$0xff]  ;;  %v378_v9 = vld [vmem:[%s2084_s26 + $0x20] sm:$0xff]  ;;  %s838_s11 = ssub.f32 1.0, %s1679_s30 }
  0x25   : > { %1734 = vmatprep.mubr.msk.f32.mxu0 %vm414_vm0, %v376_v5  ;;  %1761 = vmatprep.mubr.msk.f32.mxu1 %vm414_vm0, %v394_v6  ;;  %v396_v10 = vld [vmem:[%s2084_s26 + $0xb0] sm:$0xff]  ;;  %v379_v11 = vld [vmem:[%s2084_s26 + $0x28] sm:$0xff]  ;;  %v397_v12 = vld [vmem:[%s2084_s26 + $0xb8] sm:$0xff] }
  0x26   : > { %v380_v13 = vld [vmem:[%s2084_s26 + $0x30] sm:$0xff]  ;;  %v398_v14 = vld [vmem:[%s2084_s26 + $0xc0] sm:$0xff]  ;;  %v381_v15 = vld [vmem:[%s2084_s26 + $0x38] sm:$0xff] }
  0x27   : > { %v399_v16 = vld [vmem:[%s2084_s26 + $0xc8] sm:$0xff]  ;;  %v382_v17 = vld [vmem:[%s2084_s26 + $0x40] sm:$0xff]  ;;  %v400_v18 = vld [vmem:[%s2084_s26 + $0xd0] sm:$0xff] }
  0x28   : > { %1735 = vmatmul.mubr.msk.f32.gmra.mrb[2].mxu0 %vm414_vm0, %v377_v7  ;;  %1762 = vmatmul.mubr.msk.f32.gmra.mrb[2].mxu1 %vm414_vm0, %v395_v8  ;;  %v383_v19 = vld [vmem:[%s2084_s26 + $0x48] sm:$0xff]  ;;  %v401_v20 = vld [vmem:[%s2084_s26 + $0xd8] sm:$0xff]  ;;  %v384_v21 = vld [vmem:[%s2084_s26 + $0x50] sm:$0xff] }
  0x29   : > { %1737 = vmatprep.mubr.msk.f32.mxu0 %vm414_vm0, %v378_v9  ;;  %1764 = vmatprep.mubr.msk.f32.mxu1 %vm414_vm0, %v396_v10  ;;  %v402_v22 = vld [vmem:[%s2084_s26 + $0xe0] sm:$0xff]  ;;  %v385_v23 = vld [vmem:[%s2084_s26 + $0x58] sm:$0xff]  ;;  %v403_v24 = vld [vmem:[%s2084_s26 + $0xe8] sm:$0xff]  ;;  %v2202_v9 = vstv %s1679_s30 }
  0x2a   : > { %v386_v25 = vld [vmem:[%s2084_s26 + $0x60] sm:$0xff]  ;;  %v404_v26 = vld [vmem:[%s2084_s26 + $0xf0] sm:$0xff]  ;;  %v387_v27 = vld [vmem:[%s2084_s26 + $0x68] sm:$0xff] }
  0x2b   : > { %v405_v28 = vld [vmem:[%s2084_s26 + $0xf8] sm:$0xff]  ;;  %v388_v29 = vld [vmem:[%s2084_s26 + $0x70] sm:$0xff]  ;;  %v390_v31 = vld [vmem:[%s2084_s26 + $0x80] sm:$0xff] }
  0x2c   : > { %1738 = vmatmul.mubr.msk.f32.gmra.mrb[4].mxu0 %vm414_vm0, %v379_v11  ;;  %1765 = vmatmul.mubr.msk.f32.gmra.mrb[4].mxu1 %vm414_vm0, %v397_v12  ;;  %v389_v30 = vld [vmem:[%s2084_s26 + $0x78] sm:$0xff]  ;;  %v391_v32 = vld [vmem:[%s2084_s26 + $0x88] sm:$0xff] }
  0x2d   : > { %1740 = vmatprep.mubr.msk.f32.mxu0 %vm414_vm0, %v380_v13  ;;  %1767 = vmatprep.mubr.msk.f32.mxu1 %vm414_vm0, %v398_v14 }
  0x30   : > { %1741 = vmatmul.mubr.msk.f32.gmra.mrb[6].mxu0 %vm414_vm0, %v381_v15  ;;  %1768 = vmatmul.mubr.msk.f32.gmra.mrb[6].mxu1 %vm414_vm0, %v399_v16  ;;  %v2212_v15 = vstv %s838_s11 }
  0x31   : > { %1743 = vmatprep.mubr.msk.f32.mxu0 %vm414_vm0, %v382_v17  ;;  %1770 = vmatprep.mubr.msk.f32.mxu1 %vm414_vm0, %v400_v18 }
  0x34   : > { %1744 = vmatmul.mubr.msk.f32.gmra.mrb[8].mxu0 %vm414_vm0, %v383_v19  ;;  %1771 = vmatmul.mubr.msk.f32.gmra.mrb[8].mxu1 %vm414_vm0, %v401_v20 }
  0x35   : > { %1746 = vmatprep.mubr.msk.f32.mxu0 %vm414_vm0, %v384_v21  ;;  %1773 = vmatprep.mubr.msk.f32.mxu1 %vm414_vm0, %v402_v22 }
  0x38   : > { %1747 = vmatmul.mubr.msk.f32.gmra.mrb[10].mxu0 %vm414_vm0, %v385_v23  ;;  %1774 = vmatmul.mubr.msk.f32.gmra.mrb[10].mxu1 %vm414_vm0, %v403_v24 }
  0x39   : > { %1749 = vmatprep.mubr.msk.f32.mxu0 %vm414_vm0, %v386_v25  ;;  %1776 = vmatprep.mubr.msk.f32.mxu1 %vm414_vm0, %v404_v26 }
  0x3c   : > { %1750 = vmatmul.mubr.msk.f32.gmra.mrb[12].mxu0 %vm414_vm0, %v387_v27  ;;  %1777 = vmatmul.mubr.msk.f32.gmra.mrb[12].mxu1 %vm414_vm0, %v405_v28 }
  0x3d   : > { %1752 = vmatprep.mubr.msk.f32.mxu0 %vm414_vm0, %v388_v29 }
  0x40   : > { %1753 = vmatmul.mubr.msk.f32.gmra.mrb[14].mxu0 %vm414_vm0, %v389_v30  ;;  %v2234_v30 = vld [vmem:[%s3036_s4] ss:$0 sm:$0xff] }
  0x41   : > { %1755 = vmatprep.mubr.msk.f32.mxu0 %vm414_vm0, %v390_v31 }
  0x44   : > { %1756 = vmatmul.mubr.msk.f32.gmra.mrb[16].mxu0 %vm414_vm0, %v391_v32 }
  0xf7   : > { %v1733_v33 = vpop.f32.mrb[0].mxu0  ;;  %v1760_v34 = vpop.f32.mrb[0].mxu1 }
  0xf8   : > { %v577_v35 = vpop.f32.mrb[1].mxu0  ;;  %v667_v36 = vpop.f32.mrb[1].mxu1  ;;  %v583_v46 = vadd.f32 %v1733_v33, %v2153_v41  ;;  %v673_v7 = vadd.f32 %v1760_v34, %v2153_v41 }
  0xf9   : > { %v578_v48 = vadd.f32 %v2153_v41, %v577_v35  ;;  %v668_v10 = vadd.f32 %v2153_v41, %v667_v36 }
  0xfa   : > { %v742_v53 = vmul.f32 %v2160_v47, %v583_v46  ;;  %v760_v16 = vmul.f32 %v2160_v47, %v673_v7  ;;  %v841_v22 = vmul.f32 %v2212_v15, %v583_v46 }
  0xfb   : > { %v1736_v37 = vpop.f32.mrb[2].mxu0  ;;  %v1763_v38 = vpop.f32.mrb[2].mxu1  ;;  %v741_v54 = vmul.f32 %v2160_v47, %v578_v48  ;;  %v759_v19 = vmul.f32 %v2160_v47, %v668_v10  ;;  %v840_v27 = vmul.f32 %v2212_v15, %v578_v48 }
  0xfc   : > { %v587_v39 = vpop.f32.mrb[3].mxu0  ;;  %v677_v40 = vpop.f32.mrb[3].mxu1  ;;  %1825 = vtanh.f32 %v742_v53  ;;  %v593_v60 = vadd.f32 %v1736_v37, %v2153_v41  ;;  %v683_v20 = vadd.f32 %v1763_v38, %v2153_v41 }
  0xfd   : > { %v588_v55 = vadd.f32 %v2153_v41, %v587_v39  ;;  %1827 = vtanh.f32 %v741_v54  ;;  %v678_v28 = vadd.f32 %v2153_v41, %v677_v40  ;;  %v2250_v40 = vld [vmem:[%s3037_s5] ss:$0 sm:$0xff] }
  0xfe   : > { %v744_v2 = vmul.f32 %v2160_v47, %v593_v60  ;;  %v762_v32 = vmul.f32 %v2160_v47, %v683_v20  ;;  %v843_v53 = vmul.f32 %v2212_v15, %v593_v60 }
  0xff   : > { %v1739_v42 = vpop.f32.mrb[4].mxu0  ;;  %v2155_v43 = vpop.f32.mrb[4].mxu1  ;;  %v743_v61 = vmul.f32 %v2160_v47, %v588_v55  ;;  %v761_v36 = vmul.f32 %v2160_v47, %v678_v28  ;;  %v842_v38 = vmul.f32 %v2212_v15, %v588_v55 }
 0x100   : > { %v597_v44 = vpop.f32.mrb[5].mxu0  ;;  %v2157_v45 = vpop.f32.mrb[5].mxu1  ;;  %v2223_v23 = vadd.f32 %v1739_v42, %v2153_v41 }
 0x101   : > { %1829 = vtanh.f32 %v743_v61  ;;  %v2208_v13 = vadd.f32 %v2153_v41, %v597_v44 }
 0x102   : > { %1831 = vtanh.f32 %v744_v2  ;;  %v746_v34 = vmul.f32 %v2160_v47, %v2223_v23 }
 0x103   : > { %v2163_v49 = vpop.f32.mrb[6].mxu0  ;;  %v2165_v50 = vpop.f32.mrb[6].mxu1  ;;  %v745_v24 = vmul.f32 %v2160_v47, %v2208_v13  ;;  %1833 = vtanh.f32 %v760_v16 }
 0x104   : > { %v2167_v51 = vpop.f32.mrb[7].mxu0  ;;  %v2169_v52 = vpop.f32.mrb[7].mxu1  ;;  %1835 = vtanh.f32 %v759_v19  ;;  %v2245_v39 = vadd.f32 %v2163_v49, %v2153_v41 }
 0x105   : > { %1837 = vtanh.f32 %v745_v24  ;;  %v858_v24 = vmul.f32 %v2212_v15, %v668_v10  ;;  %v861_v10 = vmul.f32 %v2212_v15, %v683_v20 }
 0x106   : > { %v1826_v8 = vpop.eup %1825  ;;  %1839 = vtanh.f32 %v762_v32  ;;  %v748_v49 = vmul.f32 %v2160_v47, %v2245_v39 }
 0x107   : > { %v2174_v56 = vpop.f32.mrb[8].mxu0  ;;  %v2176_v57 = vpop.f32.mrb[8].mxu1  ;;  %v807_v17 = vmul.f32 %v1826_v8, %v2202_v9  ;;  %1841 = vtanh.f32 %v746_v34 }
 0x108   : > { %v2178_v58 = vpop.f32.mrb[9].mxu0  ;;  %v2180_v59 = vpop.f32.mrb[9].mxu1  ;;  %1843 = vtanh.f32 %v761_v36  ;;  %v844_v36 = vmul.f32 %v2212_v15, %v2208_v13 }
 0x109   : > { %v1828_v12 = vpop.eup %1827  ;;  %v873_v29 = vadd.f32 %v841_v22, %v807_v17  ;;  %1845 = vtanh.f32 %v748_v49 }
 0x10a   : > { %v806_v18 = vmul.f32 %v1828_v12, %v2202_v9  ;;  %v2266_v12 = vadd.f32 %v2153_v41, %v2167_v51 }
 0x10b   : > { %v2184_v62 = vpop.f32.mrb[10].mxu0  ;;  %v2186_v63 = vpop.f32.mrb[10].mxu1  ;;  %v911_v37 = vmul.f32 %v2234_v30, %v873_v29 }
 0x10c   : > { %v2188_v0 = vpop.f32.mrb[11].mxu0  ;;  %v2190_v1 = vpop.f32.mrb[11].mxu1  ;;  %v872_v31 = vadd.f32 %v840_v27, %v806_v18  ;;  %v859_v18 = vmul.f32 %v2212_v15, %v673_v7 }
 0x10d   : > { %v1830_v26 = vpop.eup %1829  ;;  %v2255_v48 = vadd.f32 %v2250_v40, %v911_v37 }
 0x10e   : > { %v808_v33 = vmul.f32 %v1830_v26, %v2202_v9  ;;  %v1832_v35 = vpop.eup %1831  ;;  %v910_v42 = vmul.f32 %v2234_v30, %v872_v31  ;;  %v747_v31 = vmul.f32 %v2160_v47, %v2266_v12 }
 0x10f   : > { %v2193_v3 = vpop.f32.mrb[12].mxu0  ;;  %v2195_v4 = vpop.f32.mrb[12].mxu1  ;;  %v809_v44 = vmul.f32 %v1832_v35, %v2202_v9  ;;  %v1013_v17 = vmul.f32 0.044715, %v2255_v48 }
 0x110   : > { %v2197_v5 = vpop.f32.mrb[13].mxu0  ;;  %v2199_v6 = vpop.f32.mrb[13].mxu1  ;;  %v874_v46 = vadd.f32 %v842_v38, %v808_v33  ;;  %v2261_v55 = vadd.f32 %v2250_v40, %v910_v42  ;;  %1847 = vtanh.f32 %v747_v31 }
 0x111   : > { %v1834_v54 = vpop.eup %1833  ;;  %v875_v61 = vadd.f32 %v843_v53, %v809_v44  ;;  %v1045_v7 = vmul.f32 %v1013_v17, %v2255_v48  ;;  %v693_v44 = vadd.f32 %v2155_v43, %v2153_v41  ;;  %v688_v43 = vadd.f32 %v2153_v41, %v2157_v45 }
 0x112   : > { %v912_v2 = vmul.f32 %v2234_v30, %v874_v46  ;;  %v1836_v8 = vpop.eup %1835  ;;  %v825_v60 = vmul.f32 %v1834_v54, %v2202_v9  ;;  %v1012_v19 = vmul.f32 0.044715, %v2261_v55  ;;  %v860_v46 = vmul.f32 %v2212_v15, %v678_v28 }
 0x113   : > { %v2205_v11 = vpop.f32.mrb[14].mxu0  ;;  %v1838_v16 = vpop.eup %1837  ;;  %v824_v22 = vmul.f32 %v1836_v8, %v2202_v9  ;;  %v913_v26 = vmul.f32 %v2234_v30, %v875_v61  ;;  %v1077_v20 = vmul.f32 %v1045_v7, %v2255_v48  ;;  %v845_v8 = vmul.f32 %v2212_v15, %v2223_v23 }
 0x114   : > { %v2210_v14 = vpop.f32.mrb[15].mxu0  ;;  %v2276_v27 = vadd.f32 %v2250_v40, %v912_v2  ;;  %v1840_v51 = vpop.eup %1839  ;;  %v810_v29 = vmul.f32 %v1838_v16, %v2202_v9  ;;  %v891_v33 = vadd.f32 %v859_v18, %v825_v60  ;;  %v1044_v35 = vmul.f32 %v1012_v19, %v2261_v55 }
 0x115   : > { %v1842_v32 = vpop.eup %1841  ;;  %v890_v37 = vadd.f32 %v858_v24, %v824_v22  ;;  %v2287_v38 = vadd.f32 %v2250_v40, %v913_v26  ;;  %v827_v13 = vmul.f32 %v1840_v51, %v2202_v9  ;;  %v764_v18 = vmul.f32 %v2160_v47, %v693_v44 }
 0x116   : > { %v1844_v34 = vpop.eup %1843  ;;  %v1014_v42 = vmul.f32 0.044715, %v2276_v27  ;;  %v811_v53 = vmul.f32 %v1842_v32, %v2202_v9  ;;  %v876_v49 = vadd.f32 %v844_v36, %v810_v29  ;;  %v929_v54 = vmul.f32 %v2234_v30, %v891_v33 }
 0x117   : > { %v2219_v21 = vpop.f32.mrb[16].mxu0  ;;  %v826_v61 = vmul.f32 %v1844_v34, %v2202_v9  ;;  %v1076_v2 = vmul.f32 %v1044_v35, %v2261_v55  ;;  %v1846_v28 = vpop.eup %1845  ;;  %v928_v16 = vmul.f32 %v2234_v30, %v890_v37  ;;  %v1015_v17 = vmul.f32 0.044715, %v2287_v38 }
 0x118   : > { %v2227_v25 = vpop.f32.mrb[17].mxu0  ;;  %v1046_v60 = vmul.f32 %v1014_v42, %v2276_v27  ;;  %v877_v19 = vadd.f32 %v845_v8, %v811_v53  ;;  %v914_v22 = vmul.f32 %v2234_v30, %v876_v49  ;;  %v2309_v24 = vmul.f32 %v2212_v15, %v693_v44 }
 0x119   : > { %v1109_v23 = vadd.f32 %v1077_v20, %v2255_v48  ;;  %v2313_v26 = vadd.f32 %v2250_v40, %v929_v54  ;;  %v893_v45 = vadd.f32 %v861_v10, %v827_v13  ;;  %v892_v51 = vadd.f32 %v860_v46, %v826_v61 }
 0x11a   : > { %v1108_v29 = vadd.f32 %v1076_v2, %v2261_v55  ;;  %v763_v31 = vmul.f32 %v2160_v47, %v688_v43  ;;  %v813_v32 = vmul.f32 %v1846_v28, %v2202_v9  ;;  %v703_v7 = vadd.f32 %v2165_v50, %v2153_v41  ;;  %v1848_v49 = vpop.eup %1847 }
 0x11b   : > { %v2321_v33 = vadd.f32 %v2250_v40, %v928_v16  ;;  %v1047_v34 = vmul.f32 %v1015_v17, %v2287_v38  ;;  %v1078_v35 = vmul.f32 %v1046_v60, %v2276_v27  ;;  %1849 = vtanh.f32 %v764_v18 }
 0x11c   : > { %v915_v10 = vmul.f32 %v2234_v30, %v877_v19  ;;  %v2327_v36 = vadd.f32 %v2250_v40, %v914_v22  ;;  %v847_v37 = vmul.f32 %v2212_v15, %v2245_v39  ;;  %v2333_v42 = vadd.f32 %v2153_v41, %v2169_v52 }
 0x11d   : > { %v1141_v50 = vmul.f32 0.7978846, %v1109_v23  ;;  %v1031_v44 = vmul.f32 0.044715, %v2313_v26  ;;  %v931_v46 = vmul.f32 %v2234_v30, %v893_v45  ;;  %v930_v53 = vmul.f32 %v2234_v30, %v892_v51 }
 0x11e   : > { %v1140_v20 = vmul.f32 0.7978846, %v1108_v29  ;;  %1851 = vtanh.f32 %v763_v31  ;;  %v879_v54 = vadd.f32 %v847_v37, %v813_v32  ;;  %v2340_v13 = vadd.f32 %v2153_v41, %v2178_v58 }
 0x11f   : > { %v1030_v39 = vmul.f32 0.044715, %v2321_v33  ;;  %v1079_v52 = vmul.f32 %v1047_v34, %v2287_v38  ;;  %v1110_v61 = vadd.f32 %v1078_v35, %v2276_v27  ;;  %v766_v2 = vmul.f32 %v2160_v47, %v703_v7 }
 0x120   : > { %v2347_v8 = vadd.f32 %v2250_v40, %v915_v10  ;;  %v1016_v28 = vmul.f32 0.044715, %v2327_v36  ;;  %v765_v16 = vmul.f32 %v2160_v47, %v2333_v42  ;;  %v749_v58 = vmul.f32 %v2160_v47, %v2340_v13 }
 0x121   : > { %1853 = vtanh.f32 %v1141_v50  ;;  %v1063_v17 = vmul.f32 %v1031_v44, %v2313_v26  ;;  %v2356_v60 = vadd.f32 %v2250_v40, %v931_v46  ;;  %v2359_v18 = vadd.f32 %v2250_v40, %v930_v53 }
 0x122   : > { %1855 = vtanh.f32 %v1140_v20  ;;  %v917_v19 = vmul.f32 %v2234_v30, %v879_v54  ;;  %v812_v22 = vmul.f32 %v1848_v49, %v2202_v9  ;;  %v2365_v23 = vadd.f32 %v2174_v56, %v2153_v41 }
 0x123   : > { %v1062_v45 = vmul.f32 %v1030_v39, %v2321_v33  ;;  %v1111_v51 = vadd.f32 %v1079_v52, %v2287_v38  ;;  %v1142_v29 = vmul.f32 0.7978846, %v1110_v61  ;;  %1857 = vtanh.f32 %v749_v58 }
 0x124   : > { %v1017_v31 = vmul.f32 0.044715, %v2347_v8  ;;  %v1048_v32 = vmul.f32 %v1016_v28, %v2327_v36  ;;  %v862_v34 = vmul.f32 %v2212_v15, %v688_v43  ;;  %v846_v35 = vmul.f32 %v2212_v15, %v2266_v12 }
 0x125   : > { %v1850_v10 = vpop.eup %1849  ;;  %v1095_v37 = vmul.f32 %v1063_v17, %v2313_v26  ;;  %v1033_v56 = vmul.f32 0.044715, %v2356_v60  ;;  %v1032_v50 = vmul.f32 0.044715, %v2359_v18  ;;  %1859 = vtanh.f32 %v766_v2 }
 0x126   : > { %v2378_v44 = vadd.f32 %v2250_v40, %v917_v19  ;;  %v878_v46 = vadd.f32 %v846_v35, %v812_v22  ;;  %1861 = vtanh.f32 %v765_v16  ;;  %v750_v53 = vmul.f32 %v2160_v47, %v2365_v23 }
 0x127   : > { %v1094_v43 = vmul.f32 %v1062_v45, %v2321_v33  ;;  %v1143_v49 = vmul.f32 0.7978846, %v1111_v51  ;;  %1863 = vtanh.f32 %v1142_v29  ;;  %v2384_v12 = vmul.f32 %v2212_v15, %v703_v7 }
 0x128   : > { %v1852_v20 = vpop.eup %1851  ;;  %v1049_v54 = vmul.f32 %v1017_v31, %v2347_v8  ;;  %v1080_v39 = vmul.f32 %v1048_v32, %v2327_v36  ;;  %v2390_v52 = vadd.f32 %v2184_v62, %v2153_v41  ;;  %v2394_v61 = vadd.f32 %v2153_v41, %v2188_v0 }
 0x129   : > { %v1127_v2 = vadd.f32 %v1095_v37, %v2313_v26  ;;  %v1065_v28 = vmul.f32 %v1033_v56, %v2356_v60  ;;  %v1064_v7 = vmul.f32 %v1032_v50, %v2359_v18  ;;  %v829_v16 = vmul.f32 %v1850_v10, %v2202_v9 }
 0x12a   : > { %v1019_v58 = vmul.f32 0.044715, %v2378_v44  ;;  %v916_v17 = vmul.f32 %v2234_v30, %v878_v46  ;;  %1865 = vtanh.f32 %v750_v53  ;;  %v751_v62 = vmul.f32 %v2160_v47, %v2394_v61 }
 0x12b   : > { %v1854_v19 = vpop.eup %1853  ;;  %v981_v0 = vmul.f32 0.5, %v2255_v48  ;;  %v1126_v22 = vadd.f32 %v1094_v43, %v2321_v33  ;;  %1867 = vtanh.f32 %v1143_v49  ;;  %v828_v45 = vmul.f32 %v1852_v20, %v2202_v9 }
 0x12c   : > { %v1856_v51 = vpop.eup %1855  ;;  %v980_v29 = vmul.f32 0.5, %v2261_v55  ;;  %v1081_v31 = vmul.f32 %v1049_v54, %v2347_v8  ;;  %v1112_v32 = vadd.f32 %v1080_v39, %v2327_v36  ;;  %v752_v35 = vmul.f32 %v2160_v47, %v2390_v52 }
 0x12d   : > { %v1858_v10 = vpop.eup %1857  ;;  %v1159_v37 = vmul.f32 0.7978846, %v1127_v2  ;;  %v1097_v48 = vmul.f32 %v1065_v28, %v2356_v60  ;;  %v1096_v56 = vmul.f32 %v1064_v7, %v2359_v18  ;;  %1869 = vtanh.f32 %v751_v62 }
 0x12e   : > { %v2415_v50 = vmul.f32 0.5, %v2287_v38  ;;  %v895_v46 = vadd.f32 %v2309_v24, %v829_v16  ;;  %v1051_v55 = vmul.f32 %v1019_v58, %v2378_v44  ;;  %v2420_v53 = vadd.f32 %v2250_v40, %v916_v17 }
 0x12f   : > { %v1860_v43 = vpop.eup %1859  ;;  %v1205_v49 = vadd.f32 1.0, %v1854_v19  ;;  %v1204_v20 = vadd.f32 1.0, %v1856_v51  ;;  %v1158_v54 = vmul.f32 0.7978846, %v1126_v22  ;;  %v894_v39 = vadd.f32 %v862_v34, %v828_v45 }
 0x130   : > { %v1862_v2 = vpop.eup %1861  ;;  %v1113_v28 = vadd.f32 %v1081_v31, %v2347_v8  ;;  %v1144_v7 = vmul.f32 0.7978846, %v1112_v32  ;;  %v814_v62 = vmul.f32 %v1858_v10, %v2202_v9  ;;  %1871 = vtanh.f32 %v752_v35 }
 0x131   : > { %v1864_v38 = vpop.eup %1863  ;;  %1873 = vtanh.f32 %v1159_v37  ;;  %v1129_v24 = vadd.f32 %v1097_v48, %v2356_v60  ;;  %v1128_v16 = vadd.f32 %v1096_v56, %v2359_v18  ;;  %v2428_v58 = vadd.f32 %v2193_v3, %v2153_v41 }
 0x132   : > { %v933_v17 = vmul.f32 %v2234_v30, %v895_v46  ;;  %v1083_v34 = vmul.f32 %v1051_v55, %v2378_v44  ;;  %v1018_v19 = vmul.f32 0.044715, %v2420_v53  ;;  %v848_v22 = vmul.f32 %v2212_v15, %v2340_v13 }
 0x133   : > { %v2435_v45 = vmul.f32 %v1205_v49, %v981_v0  ;;  %1875 = vtanh.f32 %v1158_v54  ;;  %v982_v51 = vmul.f32 0.5, %v2276_v27  ;;  %v932_v31 = vmul.f32 %v2234_v30, %v894_v39 }
 0x134   : > { %v1866_v32 = vpop.eup %1865  ;;  %v2439_v35 = vmul.f32 %v1204_v20, %v980_v29  ;;  %v1145_v3 = vmul.f32 0.7978846, %v1113_v28  ;;  %1877 = vtanh.f32 %v1144_v7  ;;  %v880_v10 = vadd.f32 %v848_v22, %v814_v62 }
 0x135   : > { %v1868_v37 = vpop.eup %1867  ;;  %v1206_v48 = vadd.f32 1.0, %v1864_v38  ;;  %v2441_v56 = vmul.f32 0.7978846, %v1129_v24  ;;  %v2443_v46 = vmul.f32 0.7978846, %v1128_v16  ;;  %v754_v13 = vmul.f32 %v2160_v47, %v2428_v58 }
 0x136   : > { %v2448_v0 = vadd.f32 %v2250_v40, %v933_v17  ;;  %v1115_v27 = vadd.f32 %v1083_v34, %v2378_v44  ;;  %v1050_v29 = vmul.f32 %v1018_v19, %v2420_v53  ;;  %v831_v55 = vmul.f32 %v1860_v43, %v2202_v9 }
 0x137   : > { %v1870_v49 = vpop.eup %1869  ;;  %v1270_v20 = vsel %vm1268_vm1, %v2435_v45, 0.0  ;;  %v830_v54 = vmul.f32 %v1862_v2, %v2202_v9  ;;  %v864_v39 = vmul.f32 %v2212_v15, %v2333_v42  ;;  %v815_v28 = vmul.f32 %v1866_v32, %v2202_v9 }
 0x138   : > { %v1269_v7 = vsel %vm1268_vm1, %v2439_v35, 0.0  ;;  %v1207_v62 = vadd.f32 1.0, %v1868_v37  ;;  %1879 = vtanh.f32 %v1145_v3  ;;  %v918_v38 = vmul.f32 %v2234_v30, %v880_v10 }
 0x139   : > { %v2462_v24 = vmul.f32 %v1206_v48, %v982_v51  ;;  %v849_v43 = vmul.f32 %v2212_v15, %v2365_v23  ;;  %v816_v16 = vmul.f32 %v1870_v49, %v2202_v9  ;;  %1881 = vtanh.f32 %v754_v13 }
 0x13a   : > { %v1872_v2 = vpop.eup %1871  ;;  %v2468_v42 = vadd.f32 %v2250_v40, %v932_v31  ;;  %v1147_v17 = vmul.f32 0.7978846, %v1115_v27  ;;  %v1082_v34 = vmul.f32 %v1050_v29, %v2420_v53  ;;  %v897_v19 = vadd.f32 %v2384_v12, %v831_v55 }
 0x13b   : > { %3050 = vst [vmem:[#allocation5_spill] sm:$0xff] %v2462_v24  ;;  %v2472_v22 = vpop.eup %1873  ;;  %v896_v32 = vadd.f32 %v864_v39, %v830_v54  ;;  %v881_v51 = vadd.f32 %v849_v43, %v815_v28  ;;  %v2476_v3 = vadd.f32 %v2176_v57, %v2153_v41  ;;  %v850_v23 = vmul.f32 %v2212_v15, %v2394_v61 }
 0x13c   : > { %v1271_v10 = vadd.f32 %v1270_v20, %v1269_v7  ;;  %v985_v31 = vmul.f32 0.5, %v2347_v8  ;;  %v1035_v37 = vmul.f32 0.044715, %v2448_v0  ;;  %v2483_v48 = vadd.f32 %v2250_v40, %v918_v38 }
 0x13d   : > { %v2485_v12 = vpop.eup %1875  ;;  %v2488_v13 = vmul.f32 %v1207_v62, %v2415_v50  ;;  %v1272_v57 = vsel %vm1268_vm1, %v2462_v24, 0.0  ;;  %v817_v27 = vmul.f32 %v1872_v2, %v2202_v9  ;;  %v882_v29 = vadd.f32 %v850_v23, %v816_v16 }
 0x13e   : > { %v1878_v61 = vpop.eup %1877  ;;  %v1034_v55 = vmul.f32 0.044715, %v2468_v42  ;;  %1883 = vtanh.f32 %v1147_v17  ;;  %v1114_v8 = vadd.f32 %v1082_v34, %v2420_v53  ;;  %v935_v49 = vmul.f32 %v2234_v30, %v897_v19 }
 0x13f   : > { %3051 = vst [vmem:[#allocation6_spill] sm:$0xff] %v2488_v13  ;;  %v934_v20 = vmul.f32 %v2234_v30, %v896_v32  ;;  %v919_v54 = vmul.f32 %v2234_v30, %v881_v51  ;;  %v768_v50 = vmul.f32 %v2160_v47, %v2476_v3  ;;  %v851_v39 = vmul.f32 %v2212_v15, %v2390_v52 }
 0x140   : > { %v1273_v28 = vadd.f32 %v1272_v57, %v1271_v10  ;;  %v1067_v7 = vmul.f32 %v1035_v37, %v2448_v0  ;;  %v1020_v62 = vmul.f32 0.044715, %v2483_v48  ;;  %v708_v38 = vadd.f32 %v2153_v41, %v2180_v59 }
 0x141   : > { %v984_v43 = vmul.f32 0.5, %v2327_v36  ;;  %v1208_v16 = vadd.f32 1.0, %v1878_v61  ;;  %v883_v2 = vadd.f32 %v851_v39, %v817_v27  ;;  %v920_v17 = vmul.f32 %v2234_v30, %v882_v29 }
 0x142   : > { %v1880_v34 = vpop.eup %1879  ;;  %v1274_v19 = vsel %vm1268_vm1, %v2488_v13, 0.0  ;;  %v1066_v52 = vmul.f32 %v1034_v55, %v2468_v42  ;;  %v1146_v32 = vmul.f32 0.7978846, %v1114_v8  ;;  %v2512_v51 = vadd.f32 %v2250_v40, %v935_v49 }
 0x143   : > { %v1882_v23 = vpop.eup %1881  ;;  %v2515_v10 = vadd.f32 %v2250_v40, %v934_v20  ;;  %v2518_v59 = vadd.f32 %v2250_v40, %v919_v54  ;;  %1885 = vtanh.f32 %v768_v50  ;;  %v638_v36 = vadd.f32 %v2153_v41, %v2197_v5 }
 0x144   : > { %v1275_v37 = vadd.f32 %v1274_v19, %v1273_v28  ;;  %v1099_v57 = vmul.f32 %v1067_v7, %v2448_v0  ;;  %v1052_v27 = vmul.f32 %v1020_v62, %v2483_v48  ;;  %v767_v29 = vmul.f32 %v2160_v47, %v708_v38 }
 0x145   : > { %v2525_v61 = vmul.f32 %v1208_v16, %v984_v43  ;;  %v921_v55 = vmul.f32 %v2234_v30, %v883_v2  ;;  %v2529_v8 = vadd.f32 %v2250_v40, %v920_v17  ;;  %v753_v49 = vmul.f32 %v2160_v47, %v638_v36 }
 0x146   : > { %v1209_v20 = vadd.f32 1.0, %v1880_v34  ;;  %1887 = vtanh.f32 %v1146_v32  ;;  %v1037_v5 = vmul.f32 0.044715, %v2512_v51  ;;  %v819_v54 = vmul.f32 %v1882_v23, %v2202_v9 }
 0x147   : > { %3052 = vst [vmem:[#allocation7_spill] sm:$0xff] %v2525_v61  ;;  %v1098_v50 = vmul.f32 %v1066_v52, %v2468_v42  ;;  %v1036_v39 = vmul.f32 0.044715, %v2515_v10  ;;  %v1021_v28 = vmul.f32 0.044715, %v2518_v59  ;;  %1889 = vtanh.f32 %v753_v49 }
 0x148   : > { %v1884_v7 = vpop.eup %1883  ;;  %v1131_v62 = vadd.f32 %v1099_v57, %v2448_v0  ;;  %v1084_v43 = vmul.f32 %v1052_v27, %v2483_v48  ;;  %1891 = vtanh.f32 %v767_v29  ;;  %v853_v16 = vmul.f32 %v2212_v15, %v2428_v58 }
 0x149   : > { %1893 = vtanh.f32 %v2441_v56  ;;  %v1276_v2 = vsel %vm1268_vm1, %v2525_v61, 0.0  ;;  %v2545_v17 = vadd.f32 %v2250_v40, %v921_v55  ;;  %v1022_v34 = vmul.f32 0.044715, %v2529_v8 }
 0x14a   : > { %v2548_v19 = vmul.f32 %v1209_v20, %v985_v31  ;;  %v987_v52 = vmul.f32 0.5, %v2378_v44  ;;  %v1069_v32 = vmul.f32 %v1037_v5, %v2512_v51  ;;  %v885_v23 = vadd.f32 %v853_v16, %v819_v54 }
 0x14b   : > { %v2553_v57 = vadd.f32 %v1098_v50, %v2468_v42  ;;  %v1068_v58 = vmul.f32 %v1036_v39, %v2515_v10  ;;  %v1053_v56 = vmul.f32 %v1021_v28, %v2518_v59  ;;  %v2559_v27 = vadd.f32 %v2186_v63, %v2153_v41 }
 0x14c   : > { %3053 = vst [vmem:[#allocation8_spill] sm:$0xff] %v2548_v19  ;;  %v1277_v29 = vadd.f32 %v1276_v2, %v1275_v37  ;;  %v2561_v55 = vmul.f32 0.7978846, %v1131_v62  ;;  %v1211_v31 = vadd.f32 1.0, %v1884_v7  ;;  %v1116_v44 = vadd.f32 %v1084_v43, %v2483_v48 }
 0x14d   : > { %v1886_v49 = vpop.eup %1885  ;;  %v986_v20 = vmul.f32 0.5, %v2420_v53  ;;  %v867_v5 = vmul.f32 %v2212_v15, %v2476_v3  ;;  %v1023_v54 = vmul.f32 0.044715, %v2545_v17  ;;  %v1054_v50 = vmul.f32 %v1022_v34, %v2529_v8 }
 0x14e   : > { %v1278_v63 = vsel %vm1268_vm1, %v2548_v19, 0.0  ;;  %v2572_v37 = vmul.f32 %v1069_v32, %v2512_v51  ;;  %v866_v39 = vmul.f32 %v2212_v15, %v708_v38  ;;  %v923_v28 = vmul.f32 %v2234_v30, %v885_v23 }
 0x14f   : > { %v2577_v7 = vmul.f32 %v1068_v58, %v2515_v10  ;;  %v1085_v53 = vmul.f32 %v1053_v56, %v2518_v59  ;;  %v770_v3 = vmul.f32 %v2160_v47, %v2559_v27  ;;  %v718_v62 = vadd.f32 %v2153_v41, %v2190_v1 }
 0x150   : > { %v1888_v43 = vpop.eup %1887  ;;  %v2584_v16 = vmul.f32 %v1211_v31, %v987_v52  ;;  %v2586_v2 = vadd.f32 %v1278_v63, %v1277_v29  ;;  %v1148_v34 = vmul.f32 0.7978846, %v1116_v44  ;;  %v833_v38 = vmul.f32 %v1886_v49, %v2202_v9 }
 0x151   : > { %v1890_v32 = vpop.eup %1889  ;;  %v1055_v23 = vmul.f32 %v1023_v54, %v2545_v17  ;;  %v1086_v58 = vmul.f32 %v1054_v50, %v2529_v8  ;;  %v852_v56 = vmul.f32 %v2212_v15, %v638_v36  ;;  %v2594_v19 = vadd.f32 %v2205_v11, %v2153_v41 }
 0x152   : > { %3054 = vst [vmem:[#allocation9_spill] sm:$0xff] %v2584_v16  ;;  %v1892_v1 = vpop.eup %1891  ;;  %v2597_v52 = vadd.f32 %v2250_v40, %v923_v28  ;;  %v818_v29 = vmul.f32 %v1890_v32, %v2202_v9  ;;  %v2602_v31 = vadd.f32 %v2153_v41, %v2210_v14  ;;  %v2606_v44 = vadd.f32 %v2219_v21, %v2153_v41 }
 0x153   : > { %v2608_v49 = vpop.eup %1893  ;;  %v1210_v36 = vadd.f32 1.0, %v1888_v43  ;;  %v1117_v11 = vadd.f32 %v1085_v53, %v2518_v59  ;;  %1895 = vtanh.f32 %v770_v3  ;;  %v769_v54 = vmul.f32 %v2160_v47, %v718_v62 }
 0x154   : > { %v899_v50 = vadd.f32 %v867_v5, %v833_v38  ;;  %v884_v63 = vadd.f32 %v852_v56, %v818_v29  ;;  %v756_v28 = vmul.f32 %v2160_v47, %v2594_v19  ;;  %v755_v14 = vmul.f32 %v2160_v47, %v2602_v31 }
 0x155   : > { %1897 = vtanh.f32 %v1148_v34  ;;  %v832_v21 = vmul.f32 %v1892_v1, %v2202_v9  ;;  %v1118_v32 = vadd.f32 %v1086_v58, %v2529_v8  ;;  %v758_v43 = vmul.f32 %v2160_v47, %v2606_v44 }
 0x156   : > { %v1087_v53 = vmul.f32 %v1055_v23, %v2545_v17  ;;  %v1025_v3 = vmul.f32 0.044715, %v2597_v52  ;;  %v922_v5 = vmul.f32 %v2234_v30, %v884_v63  ;;  %1899 = vtanh.f32 %v756_v28 }
 0x157   : > { %v1149_v38 = vmul.f32 0.7978846, %v1117_v11  ;;  %1901 = vtanh.f32 %v769_v54  ;;  %v2625_v56 = vadd.f32 %v2153_v41, %v2199_v6  ;;  %v2629_v34 = vadd.f32 %v2153_v41, %v2227_v25 }
 0x158   : > { %v2631_v58 = vmul.f32 %v1210_v36, %v986_v20  ;;  %v2634_v1 = vadd.f32 %v2250_v40, %v922_v5  ;;  %1903 = vtanh.f32 %v755_v14  ;;  %v898_v23 = vadd.f32 %v866_v39, %v832_v21  ;;  %v1340_v39 = vld [vmem:[%s3038_s6] sm:$0xff] }
 0x159   : > { %v1150_v29 = vmul.f32 0.7978846, %v1118_v32  ;;  %v2638_v11 = vadd.f32 %v2195_v4, %v2153_v41  ;;  %1905 = vtanh.f32 %v758_v43  ;;  %v1985_v54 = vmov 0.0|0.0   ;;  %v1341_v41 = vld [vmem:[%s3038_s6 + $0x8] sm:$0xff]  ;;  %v1342_v43 = vld [vmem:[%s3038_s6 + $0x10] sm:$0xff] }
 0x15a   : > { %3055 = vst [vmem:[#allocation10_spill] sm:$0xff] %v2631_v58  ;;  %1795 = vmatprep.subr.bf16.mxu1 %v1985_v54  ;;  %v1119_v6 = vadd.f32 %v1087_v53, %v2545_v17  ;;  %v1057_v25 = vmul.f32 %v1025_v3, %v2597_v52  ;;  %v1024_v20 = vmul.f32 0.044715, %v2634_v1  ;;  %v757_v36 = vmul.f32 %v2160_v47, %v2629_v34  ;;  %v1343_v53 = vld [vmem:[%s3038_s6 + $0x18] sm:$0xff] }
 0x15b   : > { %v1282_v4 = vsel %vm1268_vm1, %v2584_v16, 0.0  ;;  %1907 = vtanh.f32 %v1149_v38  ;;  %v869_v63 = vmul.f32 %v2212_v15, %v2559_v27  ;;  %v771_v28 = vmul.f32 %v2160_v47, %v2625_v56 }
 0x15c   : > { %v937_v14 = vmul.f32 %v2234_v30, %v899_v50  ;;  %v2659_v21 = vmul.f32 %v2212_v15, %v718_v62  ;;  %v1056_v32 = vmul.f32 %v1024_v20, %v2634_v1  ;;  %1909 = vtanh.f32 %v757_v36 }
 0x15d   : > { %v1896_v27 = vpop.eup %1895  ;;  %v1280_v3 = vsel %vm1268_vm1, %v2631_v58, 0.0  ;;  %1911 = vtanh.f32 %v1150_v29  ;;  %v772_v62 = vmul.f32 %v2160_v47, %v2638_v11  ;;  %v1796_v50 = vpack.c.bf16 %v1341_v41, %v1340_v39 }
 0x15e   : > { %v936_v5 = vmul.f32 %v2234_v30, %v898_v23  ;;  %v1151_v38 = vmul.f32 0.7978846, %v1119_v6  ;;  %v1089_v20 = vmul.f32 %v1057_v25, %v2597_v52  ;;  %v1088_v36 = vmul.f32 %v1056_v32, %v2634_v1 }
 0x15f   : > { %v1898_v16 = vpop.eup %1897  ;;  %1913 = vtanh.f32 %v771_v28  ;;  %1797 = vmatpush3.bf16.msra.mxu1 %v1796_v50  ;;  %v1799_v61 = vpack.c.bf16 %v1343_v53, %v1342_v43  ;;  %v1281_v24 = vadd.f32 %v1280_v3, %v2586_v2  ;;  %v989_v29 = vmul.f32 0.5, %v2518_v59 }
 0x160   : > { %v1900_v13 = vpop.eup %1899  ;;  %v835_v58 = vmul.f32 %v1896_v27, %v2202_v9  ;;  %v1120_v47 = vadd.f32 %v1088_v36, %v2634_v1  ;;  %1798 = vmatprep.subr.bf16.mxu1 %v1985_v54  ;;  %v1987_v23 = vmov 0.0   ;;  %v2682_v25 = vadd.f32 %v2250_v40, %v937_v14 }
 0x161   : > { %1787 = vmatprep.mubr.msk.f32.mxu1 %vm1986_vm2, %v1987_v23  ;;  %v1902_v6 = vpop.eup %1901  ;;  %1915 = vtanh.f32 %v772_v62  ;;  %v821_v39 = vmul.f32 %v1900_v13, %v2202_v9  ;;  %v855_v59 = vmul.f32 %v2212_v15, %v2594_v19  ;;  %v1212_v41 = vadd.f32 1.0, %v1898_v16 }
 0x162   : > { %v1904_v2 = vpop.eup %1903  ;;  %v2688_v28 = vadd.f32 %v2250_v40, %v936_v5  ;;  %v1121_v54 = vadd.f32 %v1089_v20, %v2597_v52  ;;  %v1152_v32 = vmul.f32 0.7978846, %v1120_v47  ;;  %1917 = vtanh.f32 %v1151_v38 }
 0x163   : > { %v1906_v43 = vpop.eup %1905  ;;  %v887_v53 = vadd.f32 %v855_v59, %v821_v39  ;;  %v820_v14 = vmul.f32 %v1904_v2, %v2202_v9  ;;  %v854_v27 = vmul.f32 %v2212_v15, %v2602_v31  ;;  %1800 = vmatpush3.bf16.msra.mxu1 %v1799_v61  ;;  %v988_v13 = vmul.f32 0.5, %v2483_v48 }
 0x164   : > { %v1283_v19 = vadd.f32 %v1282_v4, %v1281_v24  ;;  %v901_v3 = vadd.f32 %v869_v63, %v835_v58  ;;  %v857_v16 = vmul.f32 %v2212_v15, %v2606_v44  ;;  %1790 = vmatprep.subr.mxu1 %v1987_v23  ;;  %1919 = vtanh.f32 %v1152_v32 }
 0x165   : > { %v1908_v62 = vpop.eup %1907  ;;  %v925_v50 = vmul.f32 %v2234_v30, %v887_v53  ;;  %v886_v5 = vadd.f32 %v854_v27, %v820_v14  ;;  %v823_v38 = vmul.f32 %v1906_v43, %v2202_v9  ;;  %v2700_v36 = vmul.f32 %v1212_v41, %v988_v13 }
 0x166   : > { %v1910_v20 = vpop.eup %1909  ;;  %v2703_v61 = vmul.f32 0.044715, %v2688_v28  ;;  %v834_v24 = vmul.f32 %v1902_v6, %v2202_v9  ;;  %v1153_v48 = vmul.f32 0.7978846, %v1121_v54  ;;  %v1213_v47 = vadd.f32 1.0, %v1908_v62 }
 0x167   : > { %v1912_v31 = vpop.eup %1911  ;;  %v2707_v44 = vadd.f32 %v2250_v40, %v925_v50  ;;  %v924_v58 = vmul.f32 %v2234_v30, %v886_v5  ;;  %v889_v4 = vadd.f32 %v857_v16, %v823_v38  ;;  %v822_v63 = vmul.f32 %v1910_v20, %v2202_v9 }
 0x168   : > { %v991_v39 = vmul.f32 0.5, %v2545_v17  ;;  %v939_v59 = vmul.f32 %v2234_v30, %v901_v3  ;;  %v856_v2 = vmul.f32 %v2212_v15, %v2629_v34  ;;  %v990_v6 = vmul.f32 0.5, %v2529_v8 }
 0x169   : > { %v1914_v41 = vpop.eup %1913  ;;  %v1027_v54 = vmul.f32 0.044715, %v2707_v44  ;;  %v2718_v32 = vadd.f32 %v2250_v40, %v924_v58  ;;  %v927_v43 = vmul.f32 %v2234_v30, %v889_v4  ;;  %v1284_v53 = vsel %vm1268_vm1, %v2700_v36, 0.0 }
 0x16a   : > { %v1214_v14 = vadd.f32 1.0, %v1912_v31  ;;  %1921 = vtanh.f32 %v1153_v48  ;;  %v888_v17 = vadd.f32 %v856_v2, %v822_v63  ;;  %v900_v13 = vadd.f32 %v2659_v21, %v834_v24 }
 0x16b   : > { %v1916_v27 = vpop.eup %1915  ;;  %v1059_v34 = vmul.f32 %v1027_v54, %v2707_v44  ;;  %v1026_v8 = vmul.f32 0.044715, %v2718_v32  ;;  %v2727_v3 = vadd.f32 %v2250_v40, %v927_v43  ;;  %v2729_v16 = vmul.f32 %v1213_v47, %v989_v29 }
 0x16c   : > { %v836_v62 = vmul.f32 %v1914_v41, %v2202_v9  ;;  %v870_v50 = vmul.f32 %v2212_v15, %v2625_v56  ;;  %v926_v5 = vmul.f32 %v2234_v30, %v888_v17  ;;  %v1918_v38 = vpop.eup %1917  ;;  %v1285_v20 = vadd.f32 %v1284_v53, %v1283_v19 }
 0x16d   : > { %v1091_v21 = vmul.f32 %v1059_v34, %v2707_v44  ;;  %v1058_v24 = vmul.f32 %v1026_v8, %v2718_v32  ;;  %v1029_v48 = vmul.f32 0.044715, %v2727_v3  ;;  %v2738_v31 = vmul.f32 %v1214_v14, %v990_v6 }
 0x16e   : > { %v837_v29 = vmul.f32 %v1916_v27, %v2202_v9  ;;  %v871_v58 = vmul.f32 %v2212_v15, %v2638_v11  ;;  %v2744_v4 = vadd.f32 %v2250_v40, %v926_v5  ;;  %v1920_v56 = vpop.eup %1919  ;;  %v938_v63 = vmul.f32 %v2234_v30, %v900_v13 }
 0x16f   : > { %v1123_v19 = vadd.f32 %v1091_v21, %v2707_v44  ;;  %v1090_v47 = vmul.f32 %v1058_v24, %v2718_v32  ;;  %v1061_v2 = vmul.f32 %v1029_v48, %v2727_v3  ;;  %v1286_v41 = vsel %vm1268_vm1, %v2729_v16, 0.0 }
 0x170   : > { %v1215_v6 = vadd.f32 1.0, %v1918_v38  ;;  %v902_v9 = vadd.f32 %v870_v50, %v836_v62  ;;  %v1028_v54 = vmul.f32 0.044715, %v2744_v4  ;;  %v1287_v15 = vadd.f32 %v1286_v41, %v1285_v20 }
 0x171   : > { %v1155_v11 = vmul.f32 0.7978846, %v1123_v19  ;;  %v1122_v43 = vadd.f32 %v1090_v47, %v2718_v32  ;;  %v1093_v53 = vmul.f32 %v1061_v2, %v2727_v3  ;;  %v1288_v14 = vsel %vm1268_vm1, %v2738_v31, 0.0 }
 0x172   : > { %v1216_v17 = vadd.f32 1.0, %v1920_v56  ;;  %v903_v27 = vadd.f32 %v871_v58, %v837_v29  ;;  %v1060_v13 = vmul.f32 %v1028_v54, %v2744_v4  ;;  %v2759_v34 = vadd.f32 %v2250_v40, %v938_v63 }
 0x173   : > { %1923 = vtanh.f32 %v1155_v11  ;;  %v1154_v8 = vmul.f32 0.7978846, %v1122_v43  ;;  %v1125_v62 = vadd.f32 %v1093_v53, %v2727_v3  ;;  %v2762_v5 = vmul.f32 %v1215_v6, %v991_v39 }
 0x174   : > { %v1922_v50 = vpop.eup %1921  ;;  %v992_v38 = vmul.f32 0.5, %v2634_v1  ;;  %v940_v20 = vmul.f32 %v2234_v30, %v902_v9  ;;  %v1092_v21 = vmul.f32 %v1060_v13, %v2744_v4  ;;  %v1039_v24 = vmul.f32 0.044715, %v2682_v25 }
 0x175   : > { %v1289_v48 = vadd.f32 %v1288_v14, %v1287_v15  ;;  %1925 = vtanh.f32 %v1154_v8  ;;  %v1157_v29 = vmul.f32 0.7978846, %v1125_v62  ;;  %v2769_v58 = vadd.f32 %v2250_v40, %v939_v59 }
 0x176   : > { %v2771_v56 = vmul.f32 %v1216_v17, %v992_v38  ;;  %v941_v63 = vmul.f32 %v2234_v30, %v903_v27  ;;  %v1124_v39 = vadd.f32 %v1092_v21, %v2744_v4  ;;  %v1070_v1 = vmul.f32 %v2703_v61, %v2688_v28 }
 0x177   : > { %v1040_v19 = vmul.f32 0.044715, %v2759_v34  ;;  %v1217_v47 = vadd.f32 1.0, %v1922_v50  ;;  %1927 = vtanh.f32 %v1157_v29  ;;  %v1162_v2 = vmul.f32 0.7978846, %v2553_v57 }
 0x178   : > { %v1290_v41 = vsel %vm1268_vm1, %v2762_v5, 0.0  ;;  %v2782_v59 = vadd.f32 %v2250_v40, %v940_v20  ;;  %v1156_v6 = vmul.f32 0.7978846, %v1124_v39  ;;  %v1133_v30 = vadd.f32 %v2572_v37, %v2512_v51 }
 0x179   : > { %v1071_v9 = vmul.f32 %v1039_v24, %v2682_v25  ;;  %v993_v61 = vmul.f32 0.5, %v2597_v52  ;;  %v1291_v54 = vadd.f32 %v1290_v41, %v1289_v48  ;;  %v1041_v15 = vmul.f32 0.044715, %v2769_v58 }
 0x17a   : > { %v1292_v57 = vsel %vm1268_vm1, %v2771_v56, 0.0  ;;  %v2792_v11 = vadd.f32 %v2250_v40, %v941_v63  ;;  %1929 = vtanh.f32 %v1156_v6  ;;  %v1132_v43 = vadd.f32 %v2577_v7, %v2515_v10 }
 0x17b   : > { %v1102_v53 = vmul.f32 %v1070_v1, %v2688_v28  ;;  %v1072_v37 = vmul.f32 %v1040_v19, %v2759_v34  ;;  %v2798_v14 = vmul.f32 %v1217_v47, %v993_v61  ;;  %1931 = vtanh.f32 %v2443_v46 }
 0x17c   : > { %v1042_v52 = vmul.f32 0.044715, %v2782_v59  ;;  %1933 = vtanh.f32 %v2561_v55  ;;  %v1165_v27 = vmul.f32 0.7978846, %v1133_v30  ;;  %v1103_v40 = vmul.f32 %v1071_v9, %v2682_v25 }
 0x17d   : > { %v1924_v17 = vpop.eup %1923  ;;  %v1293_v13 = vadd.f32 %v1292_v57, %v1291_v54  ;;  %1935 = vtanh.f32 %v1162_v2  ;;  %v1073_v7 = vmul.f32 %v1041_v15, %v2769_v58  ;;  %v1043_v8 = vmul.f32 0.044715, %v2792_v11 }
 0x17e   : > { %v1219_v62 = vadd.f32 1.0, %v1924_v17  ;;  %v1164_v38 = vmul.f32 0.7978846, %v1132_v43  ;;  %v1134_v20 = vadd.f32 %v1102_v53, %v2688_v28  ;;  %v1104_v46 = vmul.f32 %v1072_v37, %v2759_v34 }
 0x17f   : > { %v1926_v50 = vpop.eup %1925  ;;  %v1294_v21 = vsel %vm1268_vm1, %v2798_v14, 0.0  ;;  %v1074_v55 = vmul.f32 %v1042_v52, %v2782_v59  ;;  %v995_v24 = vmul.f32 0.5, %v2707_v44  ;;  %v994_v48 = vmul.f32 0.5, %v2718_v32 }
 0x180   : > { %v1218_v29 = vadd.f32 1.0, %v1926_v50  ;;  %v999_v39 = vmul.f32 0.5, %v2313_v26  ;;  %1937 = vtanh.f32 %v1165_v27  ;;  %v1135_v1 = vadd.f32 %v1103_v40, %v2682_v25 }
 0x181   : > { %v1928_v63 = vpop.eup %1927  ;;  %v1295_v19 = vadd.f32 %v1294_v21, %v1293_v13  ;;  %v1105_v47 = vmul.f32 %v1073_v7, %v2769_v58  ;;  %v1075_v2 = vmul.f32 %v1043_v8, %v2792_v11  ;;  %v2817_v41 = vmul.f32 %v1219_v62, %v995_v24 }
 0x182   : > { %v2819_v6 = vmul.f32 %v1218_v29, %v994_v48  ;;  %v998_v44 = vmul.f32 0.5, %v2321_v33  ;;  %v1222_v32 = vadd.f32 1.0, %v2485_v12  ;;  %1939 = vtanh.f32 %v1164_v38 }
 0x183   : > { %v1221_v30 = vadd.f32 1.0, %v1928_v63  ;;  %v1166_v26 = vmul.f32 0.7978846, %v1134_v20  ;;  %v1136_v61 = vadd.f32 %v1104_v46, %v2759_v34  ;;  %v1106_v54 = vmul.f32 %v1074_v55, %v2782_v59 }
 0x184   : > { %v1930_v9 = vpop.eup %1929  ;;  %v1296_v15 = vsel %vm1268_vm1, %v2819_v6, 0.0  ;;  %v997_v43 = vmul.f32 0.5, %v2727_v3  ;;  %v996_v53 = vmul.f32 0.5, %v2744_v4  ;;  %v1167_v52 = vmul.f32 0.7978846, %v1135_v1 }
 0x185   : > { %v1297_v57 = vadd.f32 %v1296_v15, %v1295_v19  ;;  %v1220_v37 = vadd.f32 1.0, %v1930_v9  ;;  %v1932_v33 = vpop.eup %1931  ;;  %v1137_v12 = vadd.f32 %v1105_v47, %v2769_v58  ;;  %v1107_v17 = vmul.f32 %v1075_v2, %v2792_v11 }
 0x186   : > { %v1298_v27 = vsel %vm1268_vm1, %v2817_v41, 0.0  ;;  %v1934_v40 = vpop.eup %1933  ;;  %v1223_v13 = vadd.f32 1.0, %v2472_v22  ;;  %v2834_v7 = vmul.f32 %v1221_v30, %v997_v43  ;;  %1941 = vtanh.f32 %v1166_v26 }
 0x187   : > { %v2836_v8 = vmul.f32 %v1220_v37, %v996_v53  ;;  %v1299_v3 = vadd.f32 %v1298_v27, %v1297_v57  ;;  %v1936_v62 = vpop.eup %1935  ;;  %v1168_v4 = vmul.f32 0.7978846, %v1136_v61  ;;  %v1138_v50 = vadd.f32 %v1106_v54, %v2782_v59 }
 0x188   : > { %v2839_v38 = vmul.f32 %v1222_v32, %v998_v44  ;;  %v1000_v20 = vmul.f32 0.5, %v2359_v18  ;;  %v1224_v46 = vadd.f32 1.0, %v1932_v33  ;;  %1943 = vtanh.f32 %v1167_v52 }
 0x189   : > { %v1300_v21 = vsel %vm1268_vm1, %v2836_v8, 0.0  ;;  %v1169_v22 = vmul.f32 0.7978846, %v1137_v12  ;;  %v1139_v55 = vadd.f32 %v1107_v17, %v2792_v11  ;;  %v2845_v29 = vmul.f32 %v1223_v13, %v999_v39 }
 0x18a   : > { %v1301_v24 = vadd.f32 %v1300_v21, %v1299_v3  ;;  %v1938_v48 = vpop.eup %1937  ;;  %v1001_v63 = vmul.f32 0.5, %v2356_v60  ;;  %v1225_v1 = vadd.f32 1.0, %v2608_v49  ;;  %v1302_v19 = vsel %vm1268_vm1, %v2834_v7, 0.0 }
 0x18b   : > { %1945 = vtanh.f32 %v1168_v4  ;;  %v1170_v18 = vmul.f32 0.7978846, %v1138_v50  ;;  %v1304_v44 = vsel %vm1268_vm1, %v2839_v38, 0.0  ;;  %v2853_v32 = vmul.f32 %v1224_v46, %v1000_v20 }
 0x18c   : > { %v1303_v47 = vadd.f32 %v1302_v19, %v1301_v24  ;;  %v1940_v2 = vpop.eup %1939  ;;  %v1002_v30 = vmul.f32 0.5, %v2468_v42  ;;  %v1226_v39 = vadd.f32 1.0, %v1936_v62  ;;  %1947 = vtanh.f32 %v1169_v22 }
 0x18d   : > { %v1171_v9 = vmul.f32 0.7978846, %v1139_v55  ;;  %v1306_v49 = vsel %vm1268_vm1, %v2845_v29, 0.0  ;;  %v2858_v26 = vmul.f32 %v1225_v1, %v1001_v63  ;;  %v1003_v61 = vmul.f32 0.5, %v2448_v0 }
 0x18e   : > { %v1305_v60 = vadd.f32 %v1304_v44, %v1303_v47  ;;  %v1227_v54 = vadd.f32 1.0, %v1934_v40  ;;  %1949 = vtanh.f32 %v1170_v18  ;;  %v1308_v57 = vsel %vm1268_vm1, %v2853_v32, 0.0 }
 0x18f   : > { %v2863_v43 = vmul.f32 %v1226_v39, %v1002_v30  ;;  %v1004_v42 = vmul.f32 0.5, %v2515_v10  ;;  %v1228_v53 = vadd.f32 1.0, %v1940_v2  ;;  %1951 = vtanh.f32 %v1171_v9 }
 0x190   : > { %v1307_v15 = vadd.f32 %v1306_v49, %v1305_v60  ;;  %v1942_v37 = vpop.eup %1941  ;;  %v1310_v52 = vsel %vm1268_vm1, %v2858_v26, 0.0  ;;  %v2868_v12 = vmul.f32 %v1227_v54, %v1003_v61  ;;  %v1005_v0 = vmul.f32 0.5, %v2512_v51 }
 0x191   : > { %v1229_v17 = vadd.f32 1.0, %v1938_v48  ;;  %v1312_v13 = vsel %vm1268_vm1, %v2863_v43, 0.0  ;;  %v2873_v3 = vmul.f32 %v1228_v53, %v1004_v42  ;;  %v1006_v10 = vmul.f32 0.5, %v2688_v28 }
 0x192   : > { %v1309_v33 = vadd.f32 %v1308_v57, %v1307_v15  ;;  %v1944_v27 = vpop.eup %1943  ;;  %v1230_v62 = vadd.f32 1.0, %v1942_v37  ;;  %v1314_v20 = vsel %vm1268_vm1, %v2868_v12, 0.0  ;;  %v1007_v51 = vmul.f32 0.5, %v2682_v25 }
 0x193   : > { %v2878_v46 = vmul.f32 %v1229_v17, %v1005_v0  ;;  %v1231_v21 = vadd.f32 1.0, %v1944_v27  ;;  %v1316_v24 = vsel %vm1268_vm1, %v2873_v3, 0.0  ;;  %v1008_v28 = vmul.f32 0.5, %v2759_v34 }
 0x194   : > { %v1311_v40 = vadd.f32 %v1310_v52, %v1309_v33  ;;  %v2883_v48 = vmul.f32 %v1230_v62, %v1006_v10  ;;  %v1009_v25 = vmul.f32 0.5, %v2769_v58  ;;  %v1010_v34 = vmul.f32 0.5, %v2782_v59 }
 0x195   : > { %v1946_v4 = vpop.eup %1945  ;;  %v1318_v18 = vsel %vm1268_vm1, %v2878_v46, 0.0  ;;  %v2888_v47 = vmul.f32 %v1231_v21, %v1007_v51  ;;  %v1011_v15 = vmul.f32 0.5, %v2792_v11  ;;  %v1419_v51 = vld [vmem:[%s3040_s8] sm:$0xff] }
 0x196   : > { %v1313_v50 = vadd.f32 %v1312_v13, %v1311_v40  ;;  %v1948_v22 = vpop.eup %1947  ;;  %v1232_v63 = vadd.f32 1.0, %v1946_v4  ;;  %v1320_v39 = vsel %vm1268_vm1, %v2883_v48, 0.0  ;;  %v1344_v21 = vld [vmem:[%s3039_s7] sm:$0x1] }
 0x197   : > { %v1233_v2 = vadd.f32 1.0, %v1948_v22  ;;  %v1322_v61 = vsel %vm1268_vm1, %v2888_v47, 0.0 }
 0x198   : > { %v1315_v55 = vadd.f32 %v1314_v20, %v1313_v50  ;;  %v1950_v1 = vpop.eup %1949  ;;  %v2893_v9 = vmul.f32 %v1232_v63, %v1008_v28 }
 0x199   : > { %v1952_v44 = vpop.eup %1951  ;;  %v1234_v60 = vadd.f32 1.0, %v1950_v1  ;;  %v2898_v54 = vmul.f32 %v1233_v2, %v1009_v25 }
 0x19a   : > { %v1317_v19 = vadd.f32 %v1316_v24, %v1315_v55  ;;  %v1235_v58 = vadd.f32 1.0, %v1952_v44  ;;  %v1324_v42 = vsel %vm1268_vm1, %v2893_v9, 0.0  ;;  %v1500_v44 = vlaneseq }
 0x19b   : > { %v2903_v53 = vmul.f32 %v1234_v60, %v1010_v34  ;;  %v1326_v59 = vsel %vm1268_vm1, %v2898_v54, 0.0 }
 0x19c   : > { %v1319_v30 = vadd.f32 %v1318_v18, %v1317_v19  ;;  %v2907_v33 = vmul.f32 %v1235_v58, %v1011_v15  ;;  %v3056_v15 = vld [vmem:[#allocation5_spill] sm:$0xff] }
 0x19d   : > { %v1328_v0 = vsel %vm1268_vm1, %v2903_v53, 0.0 }
 0x19e   : > { %v1321_v49 = vadd.f32 %v1320_v39, %v1319_v30  ;;  %v1330_v11 = vsel %vm1268_vm1, %v2907_v33, 0.0  ;;  %v1501_v30 = vshrl.u32 %v1500_v44, 7 }
 0x1a0   : > { %v1323_v57 = vadd.f32 %v1322_v61, %v1321_v49  ;;  %v1502_v39 = vsub.s32 0, %v1501_v30 }
 0x1a2   : > { %v1325_v37 = vadd.f32 %v1324_v42, %v1323_v57  ;;  %v3057_v57 = vld [vmem:[#allocation6_spill] sm:$0xff] }
 0x1a4   : > { %v1327_v52 = vadd.f32 %v1326_v59, %v1325_v37  ;;  %v3058_v37 = vld [vmem:[#allocation7_spill] sm:$0xff] }
 0x1a6   : > { %v1329_v17 = vadd.f32 %v1328_v0, %v1327_v52  ;;  %v3059_v52 = vld [vmem:[#allocation8_spill] sm:$0xff] }
 0x1a8   : > { %v1331_v27 = vadd.f32 %v1330_v11, %v1329_v17  ;;  %v3060_v17 = vld [vmem:[#allocation10_spill] sm:$0xff] }
 0x1aa   : > { %v1332_v40 = vrot.slane %v1331_v27, 4 }
 0x1ac   : > { %v1333_v13 = vadd.f32 %v1332_v40, %v1331_v27  ;;  %v3061_v27 = vld [vmem:[#allocation9_spill] sm:$0xff] }
 0x1ae   : > { %v1334_v10 = vrot.slane %v1333_v13, 2 }
 0x1b0   : > { %v1335_v62 = vadd.f32 %v1334_v10, %v1333_v13 }
 0x1b2   : > { %v1336_v4 = vrot.slane %v1335_v62, 1 }
 0x1b4   : > { %v1337_v50 = vadd.f32 %v1336_v4, %v1335_v62 }
 0x1b6   : > { %v1339_v20 = vmul.f32 0.00390625, %v1337_v50 }
 0x1b8   : > { %1788 = vmatmul.mubr.msk.f32.vlgmr.msra.gmra.mrb[14].mxu1 %vm1268_vm1, %v1339_v20 }
 0x1b9   : > { %1792 = vmatprep.mubr.msk.f32.mxu1 %vm1986_vm2, %v1987_v23  ;;  %1791 = vmatpush3.msra.mxu1 %v1419_v51  ;;  %v1420_v23 = vld [vmem:[%s3041_s9] sm:$0x1] }
 0x28b   : > { %v1414_v22 = vpop.f32.mrb[14].mxu1 }
 0x28c   : > { %v1415_v55 = vadd.f32 %v1414_v22, %v1344_v21  ;;  %v1789_v24 = vpop.f32.mrb[15].mxu1 }
 0x28e   : > { %v1418_v28 = vmax.f32 %v1415_v55, 0.0 }
 0x290   : > { %1793 = vmatmul.mubr.msk.f32.vlgmr.msra.gmra.mrb[16].mxu1 %vm414_vm0, %v1418_v28 }
 0x363   : > { %v1490_v63 = vpop.f32.mrb[16].mxu1 }
 0x364   : > { %v1491_v1 = vadd.f32 %v1490_v63, %v1420_v23  ;;  %v1794_v19 = vpop.f32.mrb[17].mxu1 }
 0x366   : > { %v1684_v18 = vmul.f32 -1.442695, %v1491_v1 }
 0x368   : > { %1953 = vpow2.f32 %v1684_v18 }
 0x372   : > { %v1954_v25 = vpop.eup %1953 }
 0x373   : > { %v1497_v2 = vadd.f32 1.0, %v1954_v25 }
 0x375   : > { %1955 = vrcp.f32 %v1497_v2 }
 0x37f   : > { %v1956_v34 = vpop.eup %1955 }
 0x380   : > { %v1503_v60 = vrot.slane %v1956_v34, %v1502_v39 }
 0x382   : > { %v1504_v49 = vmul.f32 %v1503_v60, %v2439_v35  ;;  %v1505_v61 = vmul.f32 %v1503_v60, %v2435_v45  ;;  %v1506_v58 = vmul.f32 %v1503_v60, %v3056_v15  ;;  %v1507_v42 = vmul.f32 %v1503_v60, %v3057_v57 }
 0x383   : > { %v1508_v59 = vmul.f32 %v1503_v60, %v3058_v37  ;;  %v1509_v0 = vmul.f32 %v1503_v60, %v3059_v52  ;;  %v1510_v11 = vmul.f32 %v1503_v60, %v3060_v17  ;;  %v1511_v40 = vmul.f32 %v1503_v60, %v3061_v27 }
 0x384   : > { %v1512_v35 = vmul.f32 %v1503_v60, %v2700_v36  ;;  %v1513_v45 = vmul.f32 %v1503_v60, %v2729_v16  ;;  %v1514_v13 = vmul.f32 %v1503_v60, %v2738_v31  ;;  %v1515_v10 = vmul.f32 %v1503_v60, %v2762_v5  ;;  %1536 = vst.msk [vmem:[%s2931_s17] sm:$0xff] %vm1268_vm1, %v1504_v49 }
 0x385   : > { %1537 = vst.msk [vmem:[%s2931_s17 + $0x8] sm:$0xff] %vm1268_vm1, %v1505_v61  ;;  %1538 = vst.msk [vmem:[%s2931_s17 + $0x10] sm:$0xff] %vm1268_vm1, %v1506_v58  ;;  %v1516_v36 = vmul.f32 %v1503_v60, %v2771_v56  ;;  %v1517_v16 = vmul.f32 %v1503_v60, %v2798_v14  ;;  %v1518_v31 = vmul.f32 %v1503_v60, %v2819_v6 }
 0x386   : > { %1539 = vst.msk [vmem:[%s2931_s17 + $0x18] sm:$0xff] %vm1268_vm1, %v1507_v42  ;;  %v1519_v5 = vmul.f32 %v1503_v60, %v2817_v41  ;;  %1540 = vst.msk [vmem:[%s2931_s17 + $0x20] sm:$0xff] %vm1268_vm1, %v1508_v59  ;;  %v1520_v56 = vmul.f32 %v1503_v60, %v2836_v8  ;;  %v1521_v14 = vmul.f32 %v1503_v60, %v2834_v7 }
 0x387   : > { %1541 = vst.msk [vmem:[%s2931_s17 + $0x28] sm:$0xff] %vm1268_vm1, %v1509_v0  ;;  %1542 = vst.msk [vmem:[%s2931_s17 + $0x30] sm:$0xff] %vm1268_vm1, %v1510_v11  ;;  %v1522_v6 = vmul.f32 %v1503_v60, %v2839_v38  ;;  %v1523_v41 = vmul.f32 %v1503_v60, %v2845_v29  ;;  %v1524_v8 = vmul.f32 %v1503_v60, %v2853_v32 }
 0x388   : > { %1543 = vst.msk [vmem:[%s2931_s17 + $0x38] sm:$0xff] %vm1268_vm1, %v1511_v40  ;;  %1544 = vst.msk [vmem:[%s2931_s17 + $0x40] sm:$0xff] %vm1268_vm1, %v1512_v35  ;;  %v1525_v7 = vmul.f32 %v1503_v60, %v2858_v26  ;;  %v1526_v38 = vmul.f32 %v1503_v60, %v2863_v43  ;;  %v1527_v29 = vmul.f32 %v1503_v60, %v2868_v12 }
 0x389   : > { %1545 = vst.msk [vmem:[%s2931_s17 + $0x48] sm:$0xff] %vm1268_vm1, %v1513_v45  ;;  %1546 = vst.msk [vmem:[%s2931_s17 + $0x50] sm:$0xff] %vm1268_vm1, %v1514_v13  ;;  %v1528_v32 = vmul.f32 %v1503_v60, %v2873_v3  ;;  %v1529_v26 = vmul.f32 %v1503_v60, %v2878_v46  ;;  %v1530_v43 = vmul.f32 %v1503_v60, %v2883_v48 }
 0x38a   : > { %1547 = vst.msk [vmem:[%s2931_s17 + $0x58] sm:$0xff] %vm1268_vm1, %v1515_v10  ;;  %1548 = vst.msk [vmem:[%s2931_s17 + $0x60] sm:$0xff] %vm1268_vm1, %v1516_v36  ;;  %v1531_v12 = vmul.f32 %v1503_v60, %v2888_v47  ;;  %v1532_v3 = vmul.f32 %v1503_v60, %v2893_v9  ;;  %v1533_v46 = vmul.f32 %v1503_v60, %v2898_v54 }
 0x38b   : > { %1549 = vst.msk [vmem:[%s2931_s17 + $0x68] sm:$0xff] %vm1268_vm1, %v1517_v16  ;;  %1550 = vst.msk [vmem:[%s2931_s17 + $0x70] sm:$0xff] %vm1268_vm1, %v1518_v31  ;;  %v1534_v48 = vmul.f32 %v1503_v60, %v2903_v53  ;;  %v1535_v47 = vmul.f32 %v1503_v60, %v2907_v33 }
 0x38c   : > { %1551 = vst.msk [vmem:[%s2931_s17 + $0x78] sm:$0xff] %vm1268_vm1, %v1519_v5  ;;  %1552 = vst.msk [vmem:[%s2931_s17 + $0x80] sm:$0xff] %vm1268_vm1, %v1520_v56 }
 0x38d   : > { %1553 = vst.msk [vmem:[%s2931_s17 + $0x88] sm:$0xff] %vm1268_vm1, %v1521_v14  ;;  %1554 = vst.msk [vmem:[%s2931_s17 + $0x90] sm:$0xff] %vm1268_vm1, %v1522_v6 }
 0x38e   : > { %1555 = vst.msk [vmem:[%s2931_s17 + $0x98] sm:$0xff] %vm1268_vm1, %v1523_v41  ;;  %1556 = vst.msk [vmem:[%s2931_s17 + $0xa0] sm:$0xff] %vm1268_vm1, %v1524_v8 }
 0x38f   : > { %1557 = vst.msk [vmem:[%s2931_s17 + $0xa8] sm:$0xff] %vm1268_vm1, %v1525_v7  ;;  %1558 = vst.msk [vmem:[%s2931_s17 + $0xb0] sm:$0xff] %vm1268_vm1, %v1526_v38 }
 0x390   : > { %1559 = vst.msk [vmem:[%s2931_s17 + $0xb8] sm:$0xff] %vm1268_vm1, %v1527_v29  ;;  %1560 = vst.msk [vmem:[%s2931_s17 + $0xc0] sm:$0xff] %vm1268_vm1, %v1528_v32 }
 0x391   : > { %1561 = vst.msk [vmem:[%s2931_s17 + $0xc8] sm:$0xff] %vm1268_vm1, %v1529_v26  ;;  %1562 = vst.msk [vmem:[%s2931_s17 + $0xd0] sm:$0xff] %vm1268_vm1, %v1530_v43 }
 0x392   : > { %1563 = vst.msk [vmem:[%s2931_s17 + $0xd8] sm:$0xff] %vm1268_vm1, %v1531_v12  ;;  %1564 = vst.msk [vmem:[%s2931_s17 + $0xe0] sm:$0xff] %vm1268_vm1, %v1532_v3 }
 0x393   : > { %1565 = vst.msk [vmem:[%s2931_s17 + $0xe8] sm:$0xff] %vm1268_vm1, %v1533_v46  ;;  %1566 = vst.msk [vmem:[%s2931_s17 + $0xf0] sm:$0xff] %vm1268_vm1, %v1534_v48 }
 0x394   : > { %1567 = vst.msk [vmem:[%s2931_s17 + $0xf8] sm:$0xff] %vm1268_vm1, %v1535_v47 }
 0x395 PF: > { %s21_s13 = sadd.s32 1, %s1982_s13  }
 0x396   : > { %p18_p1 = scmp.ge.s32.totalorder %s21_s13, 4  }
 0x398   :  { %20 = sbr.rel (!%p18_p1) target bundleno = 1 (0x1), region = 95 }
 0x39f   :  { %1589 = vsyncpa [#allocation3], 1 }
 0x3a0   :  { %1591 = vsyncpa [#allocation3 + $0x1], 1 }

</bundles_post_ra>
